<compile_context>
chip_gen: v7x
topology: tpu7x:2x2x1
jax: 0.10.0
libtpu: 0.0.40
codegen_flags: <defaults>
</compile_context>

<pallas_src>
import functools

import jax
import jax.numpy as jnp
from jax.experimental import pallas as pl
from jax.experimental.pallas import tpu as pltpu

EPS = 1e-5  # nn.LayerNorm default eps

KERNEL_PARAM_ORDER = (
    "ln1_g", "ln1_b",
    "wqkv", "bqkv", "wo", "bo",
    "ln2_g", "ln2_b",
    "w1", "b1", "w2", "b2",
)


def _round_up(n, m):
    return ((n + m - 1) // m) * m


def _layer_norm(x, gamma, beta, e_real):
    # Statistics over the REAL embedding width only (x, gamma, beta are
    # zero-padded beyond e_real, so sums over padded columns contribute 0 and
    # padded output columns come out exactly 0).
    inv_n = 1.0 / float(e_real)
    mu = jnp.sum(x, axis=-1, keepdims=True) * inv_n
    msq = jnp.sum(x * x, axis=-1, keepdims=True) * inv_n
    var = msq - mu * mu
    return (x - mu) * jax.lax.rsqrt(var + EPS) * gamma + beta


def _gelu_erf(x):
    # PyTorch nn.GELU() default (erf form). erf via Abramowitz & Stegun 7.1.26
    # (|err| <= 1.5e-7).  The 1/(1+p|z|) divide goes to the EUP approximate
    # reciprocal (separate bundle slot) instead of the VALU divide path.
    a1, a2, a3, a4, a5 = 0.254829592, -0.284496736, 1.421413741, -1.453152027, 1.061405429
    pp = 0.3275911
    z = x * (2.0 ** -0.5)
    az = jnp.abs(z)
    t = pl.reciprocal(1.0 + pp * az, approx=True)
    poly = ((((a5 * t + a4) * t + a3) * t + a2) * t + a1) * t
    erf = 1.0 - poly * jnp.exp(-az * az)
    erf = jnp.where(z >= 0, erf, -erf)
    return 0.5 * x * (1.0 + erf)


def encoder_block_kernel(num_heads, dh_pad, e_real, s_real,
                         x_ref,
                         ln1_g_ref, ln1_b_ref,
                         wqkv_ref, bqkv_ref,
                         wo_ref, bo_ref,
                         ln2_g_ref, ln2_b_ref,
                         w1_ref, b1_ref, w2_ref, b2_ref,
                         out_ref,
                         attn_acc_ref):
    f32, bf16 = jnp.float32, jnp.bfloat16

    x = x_ref[0]                                  # (S_pad, E_pad) f32
    s_pad = x.shape[0]
    ea = num_heads * dh_pad                       # padded attention width

    # ---- MultiheadSelfAttentionBlock (pre-LN) -----------------------------
    xn = _layer_norm(x, ln1_g_ref[...], ln1_b_ref[...], e_real)
    xn_b = xn.astype(bf16)

    # One fused QKV matmul; 1/sqrt(dh) folded into the Q columns of wqkv/bqkv.
    qkv = jnp.dot(xn_b, wqkv_ref[...], preferred_element_type=f32) + bqkv_ref[...]
    q_b = qkv[:, :ea].astype(bf16)                # one cast each, no per-head casts
    kT_b = qkv[:, ea:2 * ea].T.astype(bf16)       # single hoisted K transpose (Ea, S_pad)
    v_b = qkv[:, 2 * ea:].astype(bf16)

    # Mask padded key rows (only generated when S was padded in the wrapper).
    if s_pad > s_real:
        key_valid = jax.lax.broadcasted_iota(jnp.int32, (1, s_pad), 1) < s_real
    else:
        key_valid = None

    # Attention core per head; each head writes its output into the VMEM
    # scratch accumulator at a 128-lane-aligned column offset (no concat copy).
    for h in range(num_heads):
        lo = h * dh_pad
        sc = jnp.dot(q_b[:, lo:lo + dh_pad], kT_b[lo:lo + dh_pad, :],
                     preferred_element_type=f32)                     # (S_pad, S_pad)
        if key_valid is not None:
            sc = jnp.where(key_valid, sc, -1e30)
        sc = sc - jnp.max(sc, axis=-1, keepdims=True)
        p = jnp.exp(sc)
        p = p * pl.reciprocal(jnp.sum(p, axis=-1, keepdims=True), approx=True)
        attn_acc_ref[:, lo:lo + dh_pad] = jnp.dot(
            p.astype(bf16), v_b[:, lo:lo + dh_pad], preferred_element_type=f32)

    # Single full-width output projection + residual (f32).
    attn = jnp.dot(attn_acc_ref[...].astype(bf16), wo_ref[...],
                   preferred_element_type=f32)
    x1 = attn + bo_ref[...] + x

    # ---- MLPBlock (dropout == identity in eval mode) ----------------------
    yn = _layer_norm(x1, ln2_g_ref[...], ln2_b_ref[...], e_real)
    h1 = jnp.dot(yn.astype(bf16), w1_ref[...], preferred_element_type=f32) + b1_ref[...]
    h1 = _gelu_erf(h1)
    h2 = jnp.dot(h1.astype(bf16), w2_ref[...], preferred_element_type=f32) + b2_ref[...]
    out_ref[0] = (h2 + x1).astype(out_ref.dtype)


# --------------------------- parameter preparation ---------------------------

def _pad_to(a, shape):
    pads = [(0, t - s) for s, t in zip(a.shape, shape)]
    return jnp.pad(a, pads)


def _pad_head_cols(w, dh, dh_pad, H):
    # (E_in, H*dh) -> (E_in, H*dh_pad): per-head column blocks zero-padded.
    e_in = w.shape[0]
    w3 = w.reshape(e_in, H, dh)
    out = jnp.zeros((e_in, H, dh_pad), w.dtype).at[:, :, :dh].set(w3)
    return out.reshape(e_in, H * dh_pad)


def _pad_head_rows(w, dh, dh_pad, H):
    # (H*dh, E_out) -> (H*dh_pad, E_out): per-head row blocks zero-padded.
    e_out = w.shape[1]
    w3 = w.reshape(H, dh, e_out)
    out = jnp.zeros((H, dh_pad, e_out), w.dtype).at[:, :dh, :].set(w3)
    return out.reshape(H * dh_pad, e_out)


def _pad_head_vec(b, dh, dh_pad, H):
    b2 = b.reshape(H, dh)
    return jnp.zeros((H, dh_pad), b.dtype).at[:, :dh].set(b2).reshape(H * dh_pad)


def prepare_kernel_params(p, num_heads):
    """PyTorch-layout params -> padded kernel layout (bf16 matmuls, f32 rest)."""
    f32, bf16 = jnp.float32, jnp.bfloat16
    E = p["ln1_w"].shape[0]
    M = p["fc1_w"].shape[0]
    dh = E // num_heads
    dh_pad = _round_up(dh, 128)
    e_pad = _round_up(E, 128)
    m_pad = _round_up(M, 128)
    ea = num_heads * dh_pad
    scale = jnp.float32(dh) ** -0.5

    in_w = p["in_proj_w"].astype(f32)
    in_b = p["in_proj_b"].astype(f32)
    wq = in_w[:E].T * scale            # scale folded into Q weight / bias
    wk = in_w[E:2 * E].T
    wv = in_w[2 * E:].T
    bq = in_b[:E] * scale
    bk = in_b[E:2 * E]
    bv = in_b[2 * E:]

    def head_w(w):                      # (E, E) -> (e_pad, ea)
        return _pad_to(_pad_head_cols(w, dh, dh_pad, num_heads), (e_pad, ea))

    wqkv = jnp.concatenate([head_w(wq), head_w(wk), head_w(wv)], axis=1).astype(bf16)
    bqkv = jnp.concatenate([_pad_head_vec(b, dh, dh_pad, num_heads)
                            for b in (bq, bk, bv)]).reshape(1, 3 * ea).astype(f32)

    wo = _pad_to(_pad_head_rows(p["out_proj_w"].T.astype(f32), dh, dh_pad, num_heads),
                 (ea, e_pad)).astype(bf16)

    row = lambda a, n: _pad_to(a.reshape(1, -1).astype(f32), (1, n))
    params = {
        "ln1_g": row(p["ln1_w"], e_pad), "ln1_b": row(p["ln1_b"], e_pad),
        "wqkv": wqkv, "bqkv": bqkv,
        "wo": wo, "bo": row(p["out_proj_b"], e_pad),
        "ln2_g": row(p["ln2_w"], e_pad), "ln2_b": row(p["ln2_b"], e_pad),
        "w1": _pad_to(p["fc1_w"].T.astype(f32), (e_pad, m_pad)).astype(bf16),
        "b1": row(p["fc1_b"], m_pad),
        "w2": _pad_to(p["fc2_w"].T.astype(f32), (m_pad, e_pad)).astype(bf16),
        "b2": row(p["fc2_b"], e_pad),
    }
    dims = {"e_pad": e_pad, "m_pad": m_pad, "dh_pad": dh_pad, "ea": ea}
    return params, dims


# ------------------------------- entry point ---------------------------------

def transformer_encoder_block(x, torch_params, num_heads):
    B, S, E = x.shape
    kp, dims = prepare_kernel_params(torch_params, num_heads)
    e_pad, m_pad, dh_pad, ea = dims["e_pad"], dims["m_pad"], dims["dh_pad"], dims["ea"]
    s_pad = _round_up(S, 8)

    weights = [kp[k] for k in KERNEL_PARAM_ORDER]

    x_p = x.astype(jnp.float32)
    if (s_pad, e_pad) != (S, E):
        x_p = jnp.pad(x_p, ((0, 0), (0, s_pad - S), (0, e_pad - E)))

    # VMEM budget: weights counted ONCE (single-copy residency); activations
    # estimated generously with 2x headroom; double-buffered x/out tiles.
    weight_bytes = sum(int(w.size) * w.dtype.itemsize for w in weights)
    act_bytes = 4 * s_pad * (10 * e_pad     # x/xn/attn/x1/yn/h2/residuals (f32)
                             + 5 * ea       # qkv f32 + q/kT/v bf16 + head acc
                             + 3 * m_pad    # MLP hidden f32 + bf16
                             + 4 * s_pad)   # per-head score / prob tiles
    io_bytes = 2 * 2 * s_pad * e_pad * 4    # double-buffered in/out blocks
    try:
        vmem_cap = int(pltpu.get_tpu_info().vmem_capacity_bytes)
    except Exception:
        vmem_cap = 64 * 1024 * 1024         # conservative fallback (v7x-sized)
    vmem_limit = weight_bytes + io_bytes + 2 * act_bytes + (4 << 20)
    vmem_limit = int(min(max(vmem_limit, 16 << 20), vmem_cap - (8 << 20)))

    x_spec = pl.BlockSpec((1, s_pad, e_pad), lambda b: (b, 0, 0))
    # Whole-array VMEM residency for weights: copied once, not re-DMA'd or
    # double-buffered across the batch grid.
    w_specs = [pl.BlockSpec(memory_space=pltpu.MemorySpace.VMEM) for _ in weights]
    out_spec = pl.BlockSpec((1, s_pad, e_pad), lambda b: (b, 0, 0))

    out = pl.pallas_call(
        functools.partial(encoder_block_kernel, num_heads, dh_pad, E, S),
        out_shape=jax.ShapeDtypeStruct((B, s_pad, e_pad), x.dtype),
        grid_spec=pltpu.PrefetchScalarGridSpec(
            num_scalar_prefetch=0,
            grid=(B,),
            in_specs=[x_spec] + w_specs,
            out_specs=out_spec,
            scratch_shapes=[pltpu.VMEM((s_pad, ea), jnp.float32)],
        ),
        compiler_params=pltpu.CompilerParams(
            dimension_semantics=("parallel",),
            vmem_limit_bytes=vmem_limit,
        ),
    )(x_p, *weights)

    if (s_pad, e_pad) != (S, E):
        out = out[:, :S, :E]
    return out


# ------------------------------ test utilities -------------------------------

def init_torch_params(key, E, H, M):
    """Parameters in PyTorch nn.MultiheadAttention / nn.Linear layout (f32)."""
    ks = jax.random.split(key, 8)

    def w(k, shape, fan_in):
        return jax.random.normal(k, shape, jnp.float32) * (fan_in ** -0.5)

    return {
        "ln1_w": jnp.ones((E,), jnp.float32), "ln1_b": jnp.zeros((E,), jnp.float32),
        "in_proj_w": w(ks[0], (3 * E, E), E),
        "in_proj_b": w(ks[1], (3 * E,), E),
        "out_proj_w": w(ks[2], (E, E), E),
        "out_proj_b": w(ks[3], (E,), E),
        "ln2_w": jnp.ones((E,), jnp.float32), "ln2_b": jnp.zeros((E,), jnp.float32),
        "fc1_w": w(ks[4], (M, E), E), "fc1_b": w(ks[5], (M,), E),
        "fc2_w": w(ks[6], (E, M), M), "fc2_b": w(ks[7], (E,), M),
    }


def reference(x, p, num_heads):
    """Pure-JAX f32 reference mirroring the PyTorch forward (eval mode)."""
    E = x.shape[-1]
    dh = E // num_heads
    scale = dh ** -0.5

    def ln(z, g, b):
        mu = jnp.mean(z, axis=-1, keepdims=True)
        var = jnp.mean((z - mu) ** 2, axis=-1, keepdims=True)
        return (z - mu) * jax.lax.rsqrt(var + EPS) * g + b

    def one(xb):                                   # (S, E)
        S = xb.shape[0]
        xn = ln(xb, p["ln1_w"], p["ln1_b"])
        q = xn @ p["in_proj_w"][:E].T + p["in_proj_b"][:E]
        k = xn @ p["in_proj_w"][E:2 * E].T + p["in_proj_b"][E:2 * E]
        v = xn @ p["in_proj_w"][2 * E:].T + p["in_proj_b"][2 * E:]
        q = q.reshape(S, num_heads, dh).transpose(1, 0, 2)
        k = k.reshape(S, num_heads, dh).transpose(1, 0, 2)
        v = v.reshape(S, num_heads, dh).transpose(1, 0, 2)
        pw = jax.nn.softmax(jnp.einsum("hqd,hkd->hqk", q * scale, k), axis=-1)
        o = jnp.einsum("hqk,hkd->hqd", pw, v).transpose(1, 0, 2).reshape(S, E)
        attn = o @ p["out_proj_w"].T + p["out_proj_b"]
        x1 = attn + xb
        yn = ln(x1, p["ln2_w"], p["ln2_b"])
        h1 = jax.nn.gelu(yn @ p["fc1_w"].T + p["fc1_b"], approximate=False)
        return h1 @ p["fc2_w"].T + p["fc2_b"] + x1

    return jax.vmap(one)(x)


if __name__ == "__main__":
    # embedding_dim=48, num_heads=4 (module defaults); small seq / MLP for test.
    B, S, E, H, M = 2, 8, 48, 4, 128
    key = jax.random.PRNGKey(0)
    kx, kp = jax.random.split(key)
    x = jax.random.normal(kx, (B, S, E), jnp.float32)
    params = init_torch_params(kp, E, H, M)

    out = transformer_encoder_block(x, params, H)
    out = jax.block_until_ready(out)

    ref = reference(x, params, H)
    max_err = float(jnp.max(jnp.abs(out - ref)))
    # bf16 MXU operands (with f32 accumulation and f32 LN/softmax/residuals)
    # bound the deviation from the f32 reference to ~1e-2.
    assert jnp.allclose(out, ref, atol=3e-2, rtol=3e-2), f"max abs err {max_err}"
    print("KERNEL_OK")
</pallas_src>

<mosaic_0001>
module attributes {stable_mosaic.version = 11 : i64} {
  func.func @encoder_block_kernel(%arg0: i32, %arg1: memref<1x8x128xf32, #tpu.memory_space<vmem>>, %arg2: memref<1x128xf32, #tpu.memory_space<vmem>>, %arg3: memref<1x128xf32, #tpu.memory_space<vmem>>, %arg4: memref<128x1536xbf16, #tpu.memory_space<vmem>>, %arg5: memref<1x1536xf32, #tpu.memory_space<vmem>>, %arg6: memref<512x128xbf16, #tpu.memory_space<vmem>>, %arg7: memref<1x128xf32, #tpu.memory_space<vmem>>, %arg8: memref<1x128xf32, #tpu.memory_space<vmem>>, %arg9: memref<1x128xf32, #tpu.memory_space<vmem>>, %arg10: memref<128x128xbf16, #tpu.memory_space<vmem>>, %arg11: memref<1x128xf32, #tpu.memory_space<vmem>>, %arg12: memref<128x128xbf16, #tpu.memory_space<vmem>>, %arg13: memref<1x128xf32, #tpu.memory_space<vmem>>, %arg14: memref<1x8x128xf32, #tpu.memory_space<vmem>>, %arg15: memref<8x512xf32, #tpu.memory_space<vmem>>) attributes {dimension_semantics = [#tpu.dimension_semantics<parallel>], iteration_bounds = array<i64: 2>, scalar_prefetch = 0 : i64, scratch_operands = 1 : i64, tpu.core_type = #tpu.core_type<tc>, window_params = [{transform_indices = @transform_0, window_bounds = array<i64: 1, 8, 128>}, {pipeline_mode = #tpu.pipeline_mode<synchronous>, transform_indices = @transform_1, window_bounds = array<i64: 1, 128>}, {pipeline_mode = #tpu.pipeline_mode<synchronous>, transform_indices = @transform_2, window_bounds = array<i64: 1, 128>}, {pipeline_mode = #tpu.pipeline_mode<synchronous>, transform_indices = @transform_3, window_bounds = array<i64: 128, 1536>}, {pipeline_mode = #tpu.pipeline_mode<synchronous>, transform_indices = @transform_4, window_bounds = array<i64: 1, 1536>}, {pipeline_mode = #tpu.pipeline_mode<synchronous>, transform_indices = @transform_5, window_bounds = array<i64: 512, 128>}, {pipeline_mode = #tpu.pipeline_mode<synchronous>, transform_indices = @transform_6, window_bounds = array<i64: 1, 128>}, {pipeline_mode = #tpu.pipeline_mode<synchronous>, transform_indices = @transform_7, window_bounds = array<i64: 1, 128>}, {pipeline_mode = #tpu.pipeline_mode<synchronous>, transform_indices = @transform_8, window_bounds = array<i64: 1, 128>}, {pipeline_mode = #tpu.pipeline_mode<synchronous>, transform_indices = @transform_9, window_bounds = array<i64: 128, 128>}, {pipeline_mode = #tpu.pipeline_mode<synchronous>, transform_indices = @transform_10, window_bounds = array<i64: 1, 128>}, {pipeline_mode = #tpu.pipeline_mode<synchronous>, transform_indices = @transform_11, window_bounds = array<i64: 128, 128>}, {pipeline_mode = #tpu.pipeline_mode<synchronous>, transform_indices = @transform_12, window_bounds = array<i64: 1, 128>}, {transform_indices = @transform_13, window_bounds = array<i64: 1, 8, 128>}]} {
    %c0 = arith.constant 0 : index
    %c0_0 = arith.constant 0 : index
    %c0_1 = arith.constant 0 : index
    %0 = vector.load %arg1[%c0, %c0_0, %c0_1] : memref<1x8x128xf32, #tpu.memory_space<vmem>>, vector<1x8x128xf32>
    %1 = vector.shape_cast %0 : vector<1x8x128xf32> to vector<8x128xf32>
    %c0_2 = arith.constant 0 : index
    %c0_3 = arith.constant 0 : index
    %2 = vector.load %arg2[%c0_2, %c0_3] : memref<1x128xf32, #tpu.memory_space<vmem>>, vector<1x128xf32>
    %c0_4 = arith.constant 0 : index
    %c0_5 = arith.constant 0 : index
    %3 = vector.load %arg3[%c0_4, %c0_5] : memref<1x128xf32, #tpu.memory_space<vmem>>, vector<1x128xf32>
    %cst = arith.constant dense<0.000000e+00> : vector<8xf32>
    %4 = vector.multi_reduction <add>, %1, %cst [1] : vector<8x128xf32> to vector<8xf32>
    %5 = vector.shape_cast %4 : vector<8xf32> to vector<8x1xf32>
    %cst_6 = arith.constant 0.020833334 : f32
    %6 = vector.broadcast %cst_6 : f32 to vector<8x1xf32>
    %7 = arith.mulf %5, %6 : vector<8x1xf32>
    %8 = arith.mulf %1, %1 : vector<8x128xf32>
    %cst_7 = arith.constant dense<0.000000e+00> : vector<8xf32>
    %9 = vector.multi_reduction <add>, %8, %cst_7 [1] : vector<8x128xf32> to vector<8xf32>
    %10 = vector.shape_cast %9 : vector<8xf32> to vector<8x1xf32>
    %cst_8 = arith.constant 0.020833334 : f32
    %11 = vector.broadcast %cst_8 : f32 to vector<8x1xf32>
    %12 = arith.mulf %10, %11 : vector<8x1xf32>
    %13 = arith.mulf %7, %7 : vector<8x1xf32>
    %14 = arith.subf %12, %13 : vector<8x1xf32>
    %15 = vector.broadcast %7 : vector<8x1xf32> to vector<8x128xf32>
    %16 = arith.subf %1, %15 : vector<8x128xf32>
    %cst_9 = arith.constant 9.99999974E-6 : f32
    %17 = vector.broadcast %cst_9 : f32 to vector<8x1xf32>
    %18 = arith.addf %14, %17 : vector<8x1xf32>
    %19 = math.rsqrt %18 : vector<8x1xf32>
    %20 = vector.broadcast %19 : vector<8x1xf32> to vector<8x128xf32>
    %21 = arith.mulf %16, %20 : vector<8x128xf32>
    %22 = vector.broadcast %2 : vector<1x128xf32> to vector<8x128xf32>
    %23 = arith.mulf %21, %22 : vector<8x128xf32>
    %24 = vector.broadcast %3 : vector<1x128xf32> to vector<8x128xf32>
    %25 = arith.addf %23, %24 : vector<8x128xf32>
    %26 = arith.truncf %25 : vector<8x128xf32> to vector<8x128xbf16>
    %c0_10 = arith.constant 0 : index
    %c0_11 = arith.constant 0 : index
    %27 = vector.load %arg4[%c0_10, %c0_11] : memref<128x1536xbf16, #tpu.memory_space<vmem>>, vector<128x1536xbf16>
    %cst_12 = arith.constant dense<0.000000e+00> : vector<8x1536xf32>
    %28 = tpu.matmul %26, %27, %cst_12 {dimension_numbers = #tpu.dot_dimension_numbers<[1], [0], [0], [1], [0, 0, 1, 1], [], []>} : vector<8x128xbf16>, vector<128x1536xbf16>, vector<8x1536xf32> -> vector<8x1536xf32>
    %c0_13 = arith.constant 0 : index
    %c0_14 = arith.constant 0 : index
    %29 = vector.load %arg5[%c0_13, %c0_14] : memref<1x1536xf32, #tpu.memory_space<vmem>>, vector<1x1536xf32>
    %30 = vector.broadcast %29 : vector<1x1536xf32> to vector<8x1536xf32>
    %31 = arith.addf %28, %30 : vector<8x1536xf32>
    %32 = vector.extract_strided_slice %31 {offsets = [0, 0], sizes = [8, 512], strides = [1, 1]} : vector<8x1536xf32> to vector<8x512xf32>
    %33 = arith.truncf %32 : vector<8x512xf32> to vector<8x512xbf16>
    %34 = vector.extract_strided_slice %31 {offsets = [0, 512], sizes = [8, 512], strides = [1, 1]} : vector<8x1536xf32> to vector<8x512xf32>
    %35 = tpu.transpose %34, [1, 0] : vector<8x512xf32> -> vector<512x8xf32>
    %36 = arith.truncf %35 : vector<512x8xf32> to vector<512x8xbf16>
    %37 = vector.extract_strided_slice %31 {offsets = [0, 1024], sizes = [8, 512], strides = [1, 1]} : vector<8x1536xf32> to vector<8x512xf32>
    %38 = arith.truncf %37 : vector<8x512xf32> to vector<8x512xbf16>
    %39 = vector.extract_strided_slice %33 {offsets = [0, 0], sizes = [8, 128], strides = [1, 1]} : vector<8x512xbf16> to vector<8x128xbf16>
    %40 = vector.extract_strided_slice %36 {offsets = [0, 0], sizes = [128, 8], strides = [1, 1]} : vector<512x8xbf16> to vector<128x8xbf16>
    %cst_15 = arith.constant dense<0.000000e+00> : vector<8x8xf32>
    %41 = tpu.matmul %39, %40, %cst_15 {dimension_numbers = #tpu.dot_dimension_numbers<[1], [0], [0], [1], [0, 0, 1, 1], [], []>} : vector<8x128xbf16>, vector<128x8xbf16>, vector<8x8xf32> -> vector<8x8xf32>
    %cst_16 = arith.constant dense<0xFF800000> : vector<8xf32>
    %42 = vector.multi_reduction <maximumf>, %41, %cst_16 [1] : vector<8x8xf32> to vector<8xf32>
    %43 = vector.shape_cast %42 : vector<8xf32> to vector<8x1xf32>
    %44 = vector.broadcast %43 : vector<8x1xf32> to vector<8x8xf32>
    %45 = arith.subf %41, %44 : vector<8x8xf32>
    %46 = math.exp %45 : vector<8x8xf32>
    %cst_17 = arith.constant dense<0.000000e+00> : vector<8xf32>
    %47 = vector.multi_reduction <add>, %46, %cst_17 [1] : vector<8x8xf32> to vector<8xf32>
    %48 = vector.shape_cast %47 : vector<8xf32> to vector<8x1xf32>
    %49 = tpu.reciprocal %48 {approx = true} : vector<8x1xf32> -> vector<8x1xf32>
    %50 = vector.broadcast %49 : vector<8x1xf32> to vector<8x8xf32>
    %51 = arith.mulf %46, %50 : vector<8x8xf32>
    %52 = arith.truncf %51 : vector<8x8xf32> to vector<8x8xbf16>
    %53 = vector.extract_strided_slice %38 {offsets = [0, 0], sizes = [8, 128], strides = [1, 1]} : vector<8x512xbf16> to vector<8x128xbf16>
    %cst_18 = arith.constant dense<0.000000e+00> : vector<8x128xf32>
    %54 = tpu.matmul %52, %53, %cst_18 {dimension_numbers = #tpu.dot_dimension_numbers<[1], [0], [0], [1], [0, 0, 1, 1], [], []>} : vector<8x8xbf16>, vector<8x128xbf16>, vector<8x128xf32> -> vector<8x128xf32>
    %c0_19 = arith.constant 0 : index
    %c0_20 = arith.constant 0 : index
    %55 = vector.load %arg15[%c0_19, %c0_20] : memref<8x512xf32, #tpu.memory_space<vmem>>, vector<8x128xf32>
    tpu.vector_store %arg15[%c0_19, %c0_20], %54 {strides = array<i32>} : memref<8x512xf32, #tpu.memory_space<vmem>>, vector<8x128xf32>,
    %56 = vector.extract_strided_slice %33 {offsets = [0, 128], sizes = [8, 128], strides = [1, 1]} : vector<8x512xbf16> to vector<8x128xbf16>
    %57 = vector.extract_strided_slice %36 {offsets = [128, 0], sizes = [128, 8], strides = [1, 1]} : vector<512x8xbf16> to vector<128x8xbf16>
    %cst_21 = arith.constant dense<0.000000e+00> : vector<8x8xf32>
    %58 = tpu.matmul %56, %57, %cst_21 {dimension_numbers = #tpu.dot_dimension_numbers<[1], [0], [0], [1], [0, 0, 1, 1], [], []>} : vector<8x128xbf16>, vector<128x8xbf16>, vector<8x8xf32> -> vector<8x8xf32>
    %cst_22 = arith.constant dense<0xFF800000> : vector<8xf32>
    %59 = vector.multi_reduction <maximumf>, %58, %cst_22 [1] : vector<8x8xf32> to vector<8xf32>
    %60 = vector.shape_cast %59 : vector<8xf32> to vector<8x1xf32>
    %61 = vector.broadcast %60 : vector<8x1xf32> to vector<8x8xf32>
    %62 = arith.subf %58, %61 : vector<8x8xf32>
    %63 = math.exp %62 : vector<8x8xf32>
    %cst_23 = arith.constant dense<0.000000e+00> : vector<8xf32>
    %64 = vector.multi_reduction <add>, %63, %cst_23 [1] : vector<8x8xf32> to vector<8xf32>
    %65 = vector.shape_cast %64 : vector<8xf32> to vector<8x1xf32>
    %66 = tpu.reciprocal %65 {approx = true} : vector<8x1xf32> -> vector<8x1xf32>
    %67 = vector.broadcast %66 : vector<8x1xf32> to vector<8x8xf32>
    %68 = arith.mulf %63, %67 : vector<8x8xf32>
    %69 = arith.truncf %68 : vector<8x8xf32> to vector<8x8xbf16>
    %70 = vector.extract_strided_slice %38 {offsets = [0, 128], sizes = [8, 128], strides = [1, 1]} : vector<8x512xbf16> to vector<8x128xbf16>
    %cst_24 = arith.constant dense<0.000000e+00> : vector<8x128xf32>
    %71 = tpu.matmul %69, %70, %cst_24 {dimension_numbers = #tpu.dot_dimension_numbers<[1], [0], [0], [1], [0, 0, 1, 1], [], []>} : vector<8x8xbf16>, vector<8x128xbf16>, vector<8x128xf32> -> vector<8x128xf32>
    %c0_25 = arith.constant 0 : index
    %c128 = arith.constant 128 : index
    %72 = vector.load %arg15[%c0_25, %c128] : memref<8x512xf32, #tpu.memory_space<vmem>>, vector<8x128xf32>
    tpu.vector_store %arg15[%c0_25, %c128], %71 {strides = array<i32>} : memref<8x512xf32, #tpu.memory_space<vmem>>, vector<8x128xf32>,
    %73 = vector.extract_strided_slice %33 {offsets = [0, 256], sizes = [8, 128], strides = [1, 1]} : vector<8x512xbf16> to vector<8x128xbf16>
    %74 = vector.extract_strided_slice %36 {offsets = [256, 0], sizes = [128, 8], strides = [1, 1]} : vector<512x8xbf16> to vector<128x8xbf16>
    %cst_26 = arith.constant dense<0.000000e+00> : vector<8x8xf32>
    %75 = tpu.matmul %73, %74, %cst_26 {dimension_numbers = #tpu.dot_dimension_numbers<[1], [0], [0], [1], [0, 0, 1, 1], [], []>} : vector<8x128xbf16>, vector<128x8xbf16>, vector<8x8xf32> -> vector<8x8xf32>
    %cst_27 = arith.constant dense<0xFF800000> : vector<8xf32>
    %76 = vector.multi_reduction <maximumf>, %75, %cst_27 [1] : vector<8x8xf32> to vector<8xf32>
    %77 = vector.shape_cast %76 : vector<8xf32> to vector<8x1xf32>
    %78 = vector.broadcast %77 : vector<8x1xf32> to vector<8x8xf32>
    %79 = arith.subf %75, %78 : vector<8x8xf32>
    %80 = math.exp %79 : vector<8x8xf32>
    %cst_28 = arith.constant dense<0.000000e+00> : vector<8xf32>
    %81 = vector.multi_reduction <add>, %80, %cst_28 [1] : vector<8x8xf32> to vector<8xf32>
    %82 = vector.shape_cast %81 : vector<8xf32> to vector<8x1xf32>
    %83 = tpu.reciprocal %82 {approx = true} : vector<8x1xf32> -> vector<8x1xf32>
    %84 = vector.broadcast %83 : vector<8x1xf32> to vector<8x8xf32>
    %85 = arith.mulf %80, %84 : vector<8x8xf32>
    %86 = arith.truncf %85 : vector<8x8xf32> to vector<8x8xbf16>
    %87 = vector.extract_strided_slice %38 {offsets = [0, 256], sizes = [8, 128], strides = [1, 1]} : vector<8x512xbf16> to vector<8x128xbf16>
    %cst_29 = arith.constant dense<0.000000e+00> : vector<8x128xf32>
    %88 = tpu.matmul %86, %87, %cst_29 {dimension_numbers = #tpu.dot_dimension_numbers<[1], [0], [0], [1], [0, 0, 1, 1], [], []>} : vector<8x8xbf16>, vector<8x128xbf16>, vector<8x128xf32> -> vector<8x128xf32>
    %c0_30 = arith.constant 0 : index
    %c256 = arith.constant 256 : index
    %89 = vector.load %arg15[%c0_30, %c256] : memref<8x512xf32, #tpu.memory_space<vmem>>, vector<8x128xf32>
    tpu.vector_store %arg15[%c0_30, %c256], %88 {strides = array<i32>} : memref<8x512xf32, #tpu.memory_space<vmem>>, vector<8x128xf32>,
    %90 = vector.extract_strided_slice %33 {offsets = [0, 384], sizes = [8, 128], strides = [1, 1]} : vector<8x512xbf16> to vector<8x128xbf16>
    %91 = vector.extract_strided_slice %36 {offsets = [384, 0], sizes = [128, 8], strides = [1, 1]} : vector<512x8xbf16> to vector<128x8xbf16>
    %cst_31 = arith.constant dense<0.000000e+00> : vector<8x8xf32>
    %92 = tpu.matmul %90, %91, %cst_31 {dimension_numbers = #tpu.dot_dimension_numbers<[1], [0], [0], [1], [0, 0, 1, 1], [], []>} : vector<8x128xbf16>, vector<128x8xbf16>, vector<8x8xf32> -> vector<8x8xf32>
    %cst_32 = arith.constant dense<0xFF800000> : vector<8xf32>
    %93 = vector.multi_reduction <maximumf>, %92, %cst_32 [1] : vector<8x8xf32> to vector<8xf32>
    %94 = vector.shape_cast %93 : vector<8xf32> to vector<8x1xf32>
    %95 = vector.broadcast %94 : vector<8x1xf32> to vector<8x8xf32>
    %96 = arith.subf %92, %95 : vector<8x8xf32>
    %97 = math.exp %96 : vector<8x8xf32>
    %cst_33 = arith.constant dense<0.000000e+00> : vector<8xf32>
    %98 = vector.multi_reduction <add>, %97, %cst_33 [1] : vector<8x8xf32> to vector<8xf32>
    %99 = vector.shape_cast %98 : vector<8xf32> to vector<8x1xf32>
    %100 = tpu.reciprocal %99 {approx = true} : vector<8x1xf32> -> vector<8x1xf32>
    %101 = vector.broadcast %100 : vector<8x1xf32> to vector<8x8xf32>
    %102 = arith.mulf %97, %101 : vector<8x8xf32>
    %103 = arith.truncf %102 : vector<8x8xf32> to vector<8x8xbf16>
    %104 = vector.extract_strided_slice %38 {offsets = [0, 384], sizes = [8, 128], strides = [1, 1]} : vector<8x512xbf16> to vector<8x128xbf16>
    %cst_34 = arith.constant dense<0.000000e+00> : vector<8x128xf32>
    %105 = tpu.matmul %103, %104, %cst_34 {dimension_numbers = #tpu.dot_dimension_numbers<[1], [0], [0], [1], [0, 0, 1, 1], [], []>} : vector<8x8xbf16>, vector<8x128xbf16>, vector<8x128xf32> -> vector<8x128xf32>
    %c0_35 = arith.constant 0 : index
    %c384 = arith.constant 384 : index
    %106 = vector.load %arg15[%c0_35, %c384] : memref<8x512xf32, #tpu.memory_space<vmem>>, vector<8x128xf32>
    tpu.vector_store %arg15[%c0_35, %c384], %105 {strides = array<i32>} : memref<8x512xf32, #tpu.memory_space<vmem>>, vector<8x128xf32>,
    %c0_36 = arith.constant 0 : index
    %c0_37 = arith.constant 0 : index
    %107 = vector.load %arg15[%c0_36, %c0_37] : memref<8x512xf32, #tpu.memory_space<vmem>>, vector<8x512xf32>
    %108 = arith.truncf %107 : vector<8x512xf32> to vector<8x512xbf16>
    %c0_38 = arith.constant 0 : index
    %c0_39 = arith.constant 0 : index
    %109 = vector.load %arg6[%c0_38, %c0_39] : memref<512x128xbf16, #tpu.memory_space<vmem>>, vector<512x128xbf16>
    %cst_40 = arith.constant dense<0.000000e+00> : vector<8x128xf32>
    %110 = tpu.matmul %108, %109, %cst_40 {dimension_numbers = #tpu.dot_dimension_numbers<[1], [0], [0], [1], [0, 0, 1, 1], [], []>} : vector<8x512xbf16>, vector<512x128xbf16>, vector<8x128xf32> -> vector<8x128xf32>
    %c0_41 = arith.constant 0 : index
    %c0_42 = arith.constant 0 : index
    %111 = vector.load %arg7[%c0_41, %c0_42] : memref<1x128xf32, #tpu.memory_space<vmem>>, vector<1x128xf32>
    %112 = vector.broadcast %111 : vector<1x128xf32> to vector<8x128xf32>
    %113 = arith.addf %110, %112 : vector<8x128xf32>
    %114 = arith.addf %113, %1 : vector<8x128xf32>
    %c0_43 = arith.constant 0 : index
    %c0_44 = arith.constant 0 : index
    %115 = vector.load %arg8[%c0_43, %c0_44] : memref<1x128xf32, #tpu.memory_space<vmem>>, vector<1x128xf32>
    %c0_45 = arith.constant 0 : index
    %c0_46 = arith.constant 0 : index
    %116 = vector.load %arg9[%c0_45, %c0_46] : memref<1x128xf32, #tpu.memory_space<vmem>>, vector<1x128xf32>
    %cst_47 = arith.constant dense<0.000000e+00> : vector<8xf32>
    %117 = vector.multi_reduction <add>, %114, %cst_47 [1] : vector<8x128xf32> to vector<8xf32>
    %118 = vector.shape_cast %117 : vector<8xf32> to vector<8x1xf32>
    %cst_48 = arith.constant 0.020833334 : f32
    %119 = vector.broadcast %cst_48 : f32 to vector<8x1xf32>
    %120 = arith.mulf %118, %119 : vector<8x1xf32>
    %121 = arith.mulf %114, %114 : vector<8x128xf32>
    %cst_49 = arith.constant dense<0.000000e+00> : vector<8xf32>
    %122 = vector.multi_reduction <add>, %121, %cst_49 [1] : vector<8x128xf32> to vector<8xf32>
    %123 = vector.shape_cast %122 : vector<8xf32> to vector<8x1xf32>
    %cst_50 = arith.constant 0.020833334 : f32
    %124 = vector.broadcast %cst_50 : f32 to vector<8x1xf32>
    %125 = arith.mulf %123, %124 : vector<8x1xf32>
    %126 = arith.mulf %120, %120 : vector<8x1xf32>
    %127 = arith.subf %125, %126 : vector<8x1xf32>
    %128 = vector.broadcast %120 : vector<8x1xf32> to vector<8x128xf32>
    %129 = arith.subf %114, %128 : vector<8x128xf32>
    %cst_51 = arith.constant 9.99999974E-6 : f32
    %130 = vector.broadcast %cst_51 : f32 to vector<8x1xf32>
    %131 = arith.addf %127, %130 : vector<8x1xf32>
    %132 = math.rsqrt %131 : vector<8x1xf32>
    %133 = vector.broadcast %132 : vector<8x1xf32> to vector<8x128xf32>
    %134 = arith.mulf %129, %133 : vector<8x128xf32>
    %135 = vector.broadcast %115 : vector<1x128xf32> to vector<8x128xf32>
    %136 = arith.mulf %134, %135 : vector<8x128xf32>
    %137 = vector.broadcast %116 : vector<1x128xf32> to vector<8x128xf32>
    %138 = arith.addf %136, %137 : vector<8x128xf32>
    %139 = arith.truncf %138 : vector<8x128xf32> to vector<8x128xbf16>
    %c0_52 = arith.constant 0 : index
    %c0_53 = arith.constant 0 : index
    %140 = vector.load %arg10[%c0_52, %c0_53] : memref<128x128xbf16, #tpu.memory_space<vmem>>, vector<128x128xbf16>
    %cst_54 = arith.constant dense<0.000000e+00> : vector<8x128xf32>
    %141 = tpu.matmul %139, %140, %cst_54 {dimension_numbers = #tpu.dot_dimension_numbers<[1], [0], [0], [1], [0, 0, 1, 1], [], []>} : vector<8x128xbf16>, vector<128x128xbf16>, vector<8x128xf32> -> vector<8x128xf32>
    %c0_55 = arith.constant 0 : index
    %c0_56 = arith.constant 0 : index
    %142 = vector.load %arg11[%c0_55, %c0_56] : memref<1x128xf32, #tpu.memory_space<vmem>>, vector<1x128xf32>
    %143 = vector.broadcast %142 : vector<1x128xf32> to vector<8x128xf32>
    %144 = arith.addf %141, %143 : vector<8x128xf32>
    %cst_57 = arith.constant 0.707106769 : f32
    %145 = vector.broadcast %cst_57 : f32 to vector<8x128xf32>
    %146 = arith.mulf %144, %145 : vector<8x128xf32>
    %147 = math.absf %146 : vector<8x128xf32>
    %cst_58 = arith.constant 0.327591091 : f32
    %148 = vector.broadcast %cst_58 : f32 to vector<8x128xf32>
    %149 = arith.mulf %148, %147 : vector<8x128xf32>
    %cst_59 = arith.constant 1.000000e+00 : f32
    %150 = vector.broadcast %cst_59 : f32 to vector<8x128xf32>
    %151 = arith.addf %150, %149 : vector<8x128xf32>
    %152 = tpu.reciprocal %151 {approx = true} : vector<8x128xf32> -> vector<8x128xf32>
    %cst_60 = arith.constant 1.06140542 : f32
    %153 = vector.broadcast %cst_60 : f32 to vector<8x128xf32>
    %154 = arith.mulf %153, %152 : vector<8x128xf32>
    %cst_61 = arith.constant -1.45315206 : f32
    %155 = vector.broadcast %cst_61 : f32 to vector<8x128xf32>
    %156 = arith.addf %154, %155 : vector<8x128xf32>
    %157 = arith.mulf %156, %152 : vector<8x128xf32>
    %cst_62 = arith.constant 1.42141378 : f32
    %158 = vector.broadcast %cst_62 : f32 to vector<8x128xf32>
    %159 = arith.addf %157, %158 : vector<8x128xf32>
    %160 = arith.mulf %159, %152 : vector<8x128xf32>
    %cst_63 = arith.constant -0.284496725 : f32
    %161 = vector.broadcast %cst_63 : f32 to vector<8x128xf32>
    %162 = arith.addf %160, %161 : vector<8x128xf32>
    %163 = arith.mulf %162, %152 : vector<8x128xf32>
    %cst_64 = arith.constant 0.254829586 : f32
    %164 = vector.broadcast %cst_64 : f32 to vector<8x128xf32>
    %165 = arith.addf %163, %164 : vector<8x128xf32>
    %166 = arith.mulf %165, %152 : vector<8x128xf32>
    %cst_65 = arith.constant 0.000000e+00 : f32
    %167 = vector.broadcast %cst_65 : f32 to vector<8x128xf32>
    %168 = arith.subf %167, %147 : vector<8x128xf32>
    %169 = arith.mulf %168, %147 : vector<8x128xf32>
    %170 = math.exp %169 : vector<8x128xf32>
    %171 = arith.mulf %166, %170 : vector<8x128xf32>
    %cst_66 = arith.constant 1.000000e+00 : f32
    %172 = vector.broadcast %cst_66 : f32 to vector<8x128xf32>
    %173 = arith.subf %172, %171 : vector<8x128xf32>
    %cst_67 = arith.constant 0.000000e+00 : f32
    %174 = vector.broadcast %cst_67 : f32 to vector<8x128xf32>
    %175 = arith.cmpf oge, %146, %174 : vector<8x128xf32>
    %cst_68 = arith.constant 0.000000e+00 : f32
    %176 = vector.broadcast %cst_68 : f32 to vector<8x128xf32>
    %177 = arith.subf %176, %173 : vector<8x128xf32>
    %178 = arith.select %175, %173, %177 : vector<8x128xi1>, vector<8x128xf32>
    %cst_69 = arith.constant 5.000000e-01 : f32
    %179 = vector.broadcast %cst_69 : f32 to vector<8x128xf32>
    %180 = arith.mulf %179, %144 : vector<8x128xf32>
    %cst_70 = arith.constant 1.000000e+00 : f32
    %181 = vector.broadcast %cst_70 : f32 to vector<8x128xf32>
    %182 = arith.addf %181, %178 : vector<8x128xf32>
    %183 = arith.mulf %180, %182 : vector<8x128xf32>
    %184 = arith.truncf %183 : vector<8x128xf32> to vector<8x128xbf16>
    %c0_71 = arith.constant 0 : index
    %c0_72 = arith.constant 0 : index
    %185 = vector.load %arg12[%c0_71, %c0_72] : memref<128x128xbf16, #tpu.memory_space<vmem>>, vector<128x128xbf16>
    %cst_73 = arith.constant dense<0.000000e+00> : vector<8x128xf32>
    %186 = tpu.matmul %184, %185, %cst_73 {dimension_numbers = #tpu.dot_dimension_numbers<[1], [0], [0], [1], [0, 0, 1, 1], [], []>} : vector<8x128xbf16>, vector<128x128xbf16>, vector<8x128xf32> -> vector<8x128xf32>
    %c0_74 = arith.constant 0 : index
    %c0_75 = arith.constant 0 : index
    %187 = vector.load %arg13[%c0_74, %c0_75] : memref<1x128xf32, #tpu.memory_space<vmem>>, vector<1x128xf32>
    %188 = vector.broadcast %187 : vector<1x128xf32> to vector<8x128xf32>
    %189 = arith.addf %186, %188 : vector<8x128xf32>
    %190 = arith.addf %189, %114 : vector<8x128xf32>
    %c0_76 = arith.constant 0 : index
    %c0_77 = arith.constant 0 : index
    %c0_78 = arith.constant 0 : index
    %191 = vector.load %arg14[%c0_76, %c0_77, %c0_78] : memref<1x8x128xf32, #tpu.memory_space<vmem>>, vector<1x8x128xf32>
    %192 = vector.shape_cast %191 : vector<1x8x128xf32> to vector<8x128xf32>
    %193 = vector.shape_cast %190 : vector<8x128xf32> to vector<1x8x128xf32>
    tpu.vector_store %arg14[%c0_76, %c0_77, %c0_78], %193 {strides = array<i32>} : memref<1x8x128xf32, #tpu.memory_space<vmem>>, vector<1x8x128xf32>,
    return
  }
  func.func @transform_0(%arg0: i32) -> (i32, i32, i32) {
    %c0_i32 = arith.constant 0 : i32
    %c0_i32_0 = arith.constant 0 : i32
    %c0_i32_1 = arith.constant 0 : i32
    return %arg0, %c0_i32, %c0_i32_0 : i32, i32, i32
  }
  func.func @transform_1(%arg0: i32) -> (i32, i32) {
    %c0_i32 = arith.constant 0 : i32
    %c0_i32_0 = arith.constant 0 : i32
    %c0_i32_1 = arith.constant 0 : i32
    return %c0_i32, %c0_i32_0 : i32, i32
  }
  func.func @transform_2(%arg0: i32) -> (i32, i32) {
    %c0_i32 = arith.constant 0 : i32
    %c0_i32_0 = arith.constant 0 : i32
    %c0_i32_1 = arith.constant 0 : i32
    return %c0_i32, %c0_i32_0 : i32, i32
  }
  func.func @transform_3(%arg0: i32) -> (i32, i32) {
    %c0_i32 = arith.constant 0 : i32
    %c0_i32_0 = arith.constant 0 : i32
    %c0_i32_1 = arith.constant 0 : i32
    return %c0_i32, %c0_i32_0 : i32, i32
  }
  func.func @transform_4(%arg0: i32) -> (i32, i32) {
    %c0_i32 = arith.constant 0 : i32
    %c0_i32_0 = arith.constant 0 : i32
    %c0_i32_1 = arith.constant 0 : i32
    return %c0_i32, %c0_i32_0 : i32, i32
  }
  func.func @transform_5(%arg0: i32) -> (i32, i32) {
    %c0_i32 = arith.constant 0 : i32
    %c0_i32_0 = arith.constant 0 : i32
    %c0_i32_1 = arith.constant 0 : i32
    return %c0_i32, %c0_i32_0 : i32, i32
  }
  func.func @transform_6(%arg0: i32) -> (i32, i32) {
    %c0_i32 = arith.constant 0 : i32
    %c0_i32_0 = arith.constant 0 : i32
    %c0_i32_1 = arith.constant 0 : i32
    return %c0_i32, %c0_i32_0 : i32, i32
  }
  func.func @transform_7(%arg0: i32) -> (i32, i32) {
    %c0_i32 = arith.constant 0 : i32
    %c0_i32_0 = arith.constant 0 : i32
    %c0_i32_1 = arith.constant 0 : i32
    return %c0_i32, %c0_i32_0 : i32, i32
  }
  func.func @transform_8(%arg0: i32) -> (i32, i32) {
    %c0_i32 = arith.constant 0 : i32
    %c0_i32_0 = arith.constant 0 : i32
    %c0_i32_1 = arith.constant 0 : i32
    return %c0_i32, %c0_i32_0 : i32, i32
  }
  func.func @transform_9(%arg0: i32) -> (i32, i32) {
    %c0_i32 = arith.constant 0 : i32
    %c0_i32_0 = arith.constant 0 : i32
    %c0_i32_1 = arith.constant 0 : i32
    return %c0_i32, %c0_i32_0 : i32, i32
  }
  func.func @transform_10(%arg0: i32) -> (i32, i32) {
    %c0_i32 = arith.constant 0 : i32
    %c0_i32_0 = arith.constant 0 : i32
    %c0_i32_1 = arith.constant 0 : i32
    return %c0_i32, %c0_i32_0 : i32, i32
  }
  func.func @transform_11(%arg0: i32) -> (i32, i32) {
    %c0_i32 = arith.constant 0 : i32
    %c0_i32_0 = arith.constant 0 : i32
    %c0_i32_1 = arith.constant 0 : i32
    return %c0_i32, %c0_i32_0 : i32, i32
  }
  func.func @transform_12(%arg0: i32) -> (i32, i32) {
    %c0_i32 = arith.constant 0 : i32
    %c0_i32_0 = arith.constant 0 : i32
    %c0_i32_1 = arith.constant 0 : i32
    return %c0_i32, %c0_i32_0 : i32, i32
  }
  func.func @transform_13(%arg0: i32) -> (i32, i32, i32) {
    %c0_i32 = arith.constant 0 : i32
    %c0_i32_0 = arith.constant 0 : i32
    %c0_i32_1 = arith.constant 0 : i32
    return %arg0, %c0_i32, %c0_i32_0 : i32, i32, i32
  }
}

</mosaic_0001>

<bundles_post_ra>
// kernel: tpu_custom_call.1
= control target key start
LH: loop header
LB: loop body
LE: loop exit
PB: predicated region body
PF: predicated region fallthrough
CT: control target
= control target key end

     0   :  { %s4287_s0 = inlined_call_operand.hbm [shape: f32[2,8,128], index: 0, kind: input, shape index: {}]   ;;  %s4288_s1 = inlined_call_operand.vmem [shape: f32[1,128], index: 1, kind: input, shape index: {}]   ;;  %s4289_s2 = inlined_call_operand.vmem [shape: f32[1,128], index: 2, kind: input, shape index: {}]   ;;  %s4290_s3 = inlined_call_operand.hbm [shape: bf16[128,1536], index: 3, kind: input, shape index: {}]   ;;  %s4291_s4 = inlined_call_operand.vmem [shape: f32[1,1536], index: 4, kind: input, shape index: {}]   ;;  %s4292_s5 = inlined_call_operand.hbm [shape: bf16[512,128], index: 5, kind: input, shape index: {}]   ;;  %s4293_s6 = inlined_call_operand.vmem [shape: f32[1,128], index: 6, kind: input, shape index: {}]   ;;  %s4294_s7 = inlined_call_operand.vmem [shape: f32[1,128], index: 7, kind: input, shape index: {}]   ;;  %s4295_s8 = inlined_call_operand.vmem [shape: f32[1,128], index: 8, kind: input, shape index: {}]   ;;  %s4296_s9 = inlined_call_operand.hbm [shape: bf16[128,128], index: 9, kind: input, shape index: {}]   ;;  %s4297_s10 = inlined_call_operand.vmem [shape: f32[1,128], index: 10, kind: input, shape index: {}]   ;;  %s4298_s11 = inlined_call_operand.hbm [shape: bf16[128,128], index: 11, kind: input, shape index: {}]   ;;  %s4299_s12 = inlined_call_operand.vmem [shape: f32[1,128], index: 12, kind: input, shape index: {}]   ;;  %s4300_s13 = inlined_call_operand.hbm [shape: f32[2,8,128], index: 13, kind: output, shape index: {}]  }
   0x1   :  { %4305 = sst [smem:[#allocation17_spill]] %s4290_s3 }
   0x2   :  { %4306 = sst [smem:[#allocation18_spill]] %s4294_s7 }
   0x3   :  { %4307 = sst [smem:[#allocation19_spill]] %s4295_s8 }
   0x4   :  { %4308 = sst [smem:[#allocation20_spill]] %s4297_s10 }
   0x5   :  { %4309 = sst [smem:[#allocation21_spill]] %s4299_s12 }
   0x6   :  { %4310 = sst [smem:[#allocation22_spill]] %s4300_s13 }
   0x7   :  { %18 = vsyncpa [#allocation4], 0 }
   0x8   :  { %20 = vsyncpa [#allocation4 + $0x1], 0 }
   0x9   :  { %21 = vsyncpa [#allocation7], 0 }
   0xa   :  { %22 = vsyncpa [#allocation10], 0 }
   0xb   :  { %23 = vsyncpa [#allocation5], 0 }
   0xc   :  { %25 = vsyncpa [#allocation5 + $0x1], 0  ;;  %s3790_s25 = smov 0   ;;  %s3792_s26 = smov 0  }
   0xd   :  { %s3794_s27 = smov 0   ;;  %s3796_s28 = smov 0  }
   0xe LB: > { %s3707_s29 = smov [#allocation6]   ;;  %s3811_s14 = sadd.s32 4294967295, %s3705_s28   ;;  %s3705_s28 = sphi %s3796_s28, %s4337_s28   ;;  %s3701_s27 = sphi %s3794_s27, %s4336_s27   ;;  %s3697_s26 = sphi %s3792_s26, %s4335_s26   ;;  %s3693_s25 = sphi %s3790_s25, %s4334_s25  }
   0xf   : > { %s358_s30 = sshll.u32 %s3707_s29, 4  ;;  %p2754_p0 = scmp.ge.s32.totalorder %s3705_s28, 1  ;;  %s3816_s30 = int_to_ptr.vmem [resolvable:$true] %s358_s30 }
  0x10   : > { %p4302_p1 = scmp.eq.s32.totalorder %s3811_s14, 0  ;;  %p340_p2 = scmp.lt.s32.totalorder %s3705_s28, 3 }
  0x11   : > { %s3708_s17 = smov [#allocation9]   ;;  %s3709_s19 = smov [#allocation8]  }
  0x12   : > { %p3818_p3 = pnand %p2754_p0, %p340_p2  ;;  %s396_s18 = sshll.u32 %s3708_s17, 4  ;;  %s3831_s18 = int_to_ptr.vmem [resolvable:$true] %s396_s18 }
  0x13   : > { %s3833_s20 = sshll.u32 %s3709_s19, 4  ;;  %s4313_s3 = sld [smem:[#allocation17_spill]]  ;;  %s375_s20 = int_to_ptr.vmem [resolvable:$true] %s3833_s20 }
  0x14   : > { %s4311_s15 = scalar_select %p3818_p3, 1, 0 }
  0x15   : > { %p3198_p5 = pneg %p3818_p3 }
  0x17   : > { %p3827_p6 = pnand %p3198_p5, %p4302_p1 }
  0x19   : > { %s3489_s23 = scalar_lea.hbm %s4313_s3, 12288  ;;  %p3843_p8 = pneg %p3827_p6 }
  0x1a   : > { %p3490_p7 = scmp.ne.s32.totalorder %s4313_s3, %s3489_s23  ;;  %p3496_p11 = scmp.lt.u32.totalorder %s3489_s23, %s4313_s3 }
  0x1c   : > { %p3492_p9 = pnand %p3843_p8, %p3490_p7 }
  0x1e   : > { %p3493_p10 = pneg %p3492_p9 }
  0x20   : > { %p3498_p12 = pnand %p3496_p11, %p3493_p10 }
  0x22   : > { %3501 = shalt.err (!%p3498_p12)
}
  0x23   : > { %s3502_s21 = scalar_lea.vmem %s3816_s30, 12288  ;;  %p3510_p5 = scmp.lt.s32.totalorder %s3816_s30, %s3816_s30 }
  0x24   : > { %p3503_p13 = scmp.ne.s32.totalorder %s3816_s30, %s3502_s21  ;;  %p3511_p4 = scmp.lt.s32.totalorder %s3502_s21, %s3502_s21 }
  0x26   : > { %p3505_p0 = pnand %p3503_p13, %p3843_p8  ;;  %p3512_p7 = por %p3511_p4, %p3510_p5 }
  0x28   : > { %p3506_p2 = pneg %p3505_p0 }
  0x2a   : > { %p3513_p9 = pnand %p3512_p7, %p3506_p2 }
  0x2c   : > { %3516 = shalt.err (!%p3513_p9)
}
  0x2d   : > { %s3710_s22 = smov 768   ;;  %s3711_s23 = smov 48  }
  0x2e   : > { %3201 = dma.hbm_to_vmem [thread:$0]  (!%p3827_p6), %s4313_s3, 12288, %s3816_s30, [#allocation7], %s3710_s22, %s3710_s22, %s3711_s23  }
  0x2f   : > { %s3517_s12 = scalar_lea.hbm %s4296_s9, 1024 }
  0x30   : > { %p3518_p4 = scmp.ne.s32.totalorder %s4296_s9, %s3517_s12  ;;  %p3524_p12 = scmp.lt.u32.totalorder %s3517_s12, %s4296_s9 }
  0x32   : > { %p3520_p10 = pnand %p3518_p4, %p3843_p8 }
  0x34   : > { %p3521_p11 = pneg %p3520_p10 }
  0x36   : > { %p3526_p13 = pnand %p3524_p12, %p3521_p11 }
  0x38   : > { %3529 = shalt.err (!%p3526_p13)
}
  0x39   : > { %s3530_s30 = scalar_lea.vmem %s3831_s18, 1024  ;;  %p3538_p7 = scmp.lt.s32.totalorder %s3831_s18, %s3831_s18 }
  0x3a   : > { %p3531_p0 = scmp.ne.s32.totalorder %s3831_s18, %s3530_s30  ;;  %p3539_p9 = scmp.lt.s32.totalorder %s3530_s30, %s3530_s30 }
  0x3c   : > { %p3533_p2 = pnand %p3531_p0, %p3843_p8  ;;  %p3540_p4 = por %p3539_p9, %p3538_p7 }
  0x3e   : > { %p3534_p5 = pneg %p3533_p2 }
  0x40   : > { %p3541_p10 = pnand %p3540_p4, %p3534_p5 }
  0x42   : > { %3544 = shalt.err (!%p3541_p10)
}
  0x43   : > { %s3712_s8 = smov 64   ;;  %s3713_s7 = smov 4  }
  0x44   : > { %3207 = dma.hbm_to_vmem [thread:$0]  (!%p3827_p6), %s4296_s9, 1024, %s3831_s18, [#allocation10], %s3712_s8, %s3712_s8, %s3713_s7  }
  0x45   : > { %s3545_s24 = scalar_lea.hbm %s4292_s5, 4096 }
  0x46   : > { %p3546_p11 = scmp.ne.s32.totalorder %s4292_s5, %s3545_s24  ;;  %p3552_p0 = scmp.lt.u32.totalorder %s3545_s24, %s4292_s5 }
  0x48   : > { %p3548_p12 = pnand %p3546_p11, %p3843_p8 }
  0x4a   : > { %p3549_p13 = pneg %p3548_p12 }
  0x4c   : > { %p3554_p2 = pnand %p3552_p0, %p3549_p13 }
  0x4e   : > { %3557 = shalt.err (!%p3554_p2)
}
  0x4f   : > { %s3558_s30 = scalar_lea.vmem %s375_s20, 4096  ;;  %p3566_p4 = scmp.lt.s32.totalorder %s375_s20, %s375_s20 }
  0x50   : > { %p3559_p5 = scmp.ne.s32.totalorder %s375_s20, %s3558_s30  ;;  %p3567_p10 = scmp.lt.s32.totalorder %s3558_s30, %s3558_s30 }
  0x52   : > { %p3561_p7 = pnand %p3559_p5, %p3843_p8  ;;  %p3568_p1 = por %p3567_p10, %p3566_p4 }
  0x54   : > { %p3562_p9 = pneg %p3561_p7 }
  0x56   : > { %p3569_p3 = pnand %p3568_p1, %p3562_p9 }
  0x58   : > { %3572 = shalt.err (!%p3569_p3)
}
  0x59   : > { %3204 = dma.hbm_to_vmem [thread:$0]  (!%p3827_p6), %s4292_s5, 4096, %s375_s20, [#allocation7], %s3712_s8, %s3712_s8, %s3713_s7  }
  0x5a   : > { %s3714_s12 = smov [#allocation11]   ;;  %s3573_s29 = scalar_lea.hbm %s4298_s11, 1024 }
  0x5b   : > { %s412_s22 = sshll.u32 %s3714_s12, 4  ;;  %p3574_p1 = scmp.ne.s32.totalorder %s4298_s11, %s3573_s29  ;;  %s413_s22 = int_to_ptr.vmem [resolvable:$true] %s412_s22 }
  0x5c   : > { %p3580_p12 = scmp.lt.u32.totalorder %s3573_s29, %s4298_s11 }
  0x5d   : > { %p3576_p3 = pnand %p3574_p1, %p3843_p8 }
  0x5f   : > { %p3577_p11 = pneg %p3576_p3 }
  0x61   : > { %p3582_p13 = pnand %p3580_p12, %p3577_p11 }
  0x63   : > { %3585 = shalt.err (!%p3582_p13)
}
  0x64   : > { %s3586_s20 = scalar_lea.vmem %s413_s22, 1024  ;;  %p3594_p7 = scmp.lt.s32.totalorder %s413_s22, %s413_s22 }
  0x65   : > { %p3587_p0 = scmp.ne.s32.totalorder %s413_s22, %s3586_s20  ;;  %p3595_p9 = scmp.lt.s32.totalorder %s3586_s20, %s3586_s20 }
  0x67   : > { %p3589_p2 = pnand %p3587_p0, %p3843_p8  ;;  %p3596_p4 = por %p3595_p9, %p3594_p7 }
  0x69   : > { %p3590_p5 = pneg %p3589_p2 }
  0x6b   : > { %p3597_p10 = pnand %p3596_p4, %p3590_p5 }
  0x6d   : > { %3600 = shalt.err (!%p3597_p10)
}
  0x6e   : > { %3210 = dma.hbm_to_vmem [thread:$0]  (!%p3827_p6), %s4298_s11, 1024, %s413_s22, [#allocation10], %s3712_s8, %s3712_s8, %s3713_s7  }
  0x6f   : > { %s2753_s13 = sadd.s32 4294967294, %s3705_s28   ;;  %s3935_s16 = sadd.s32 1, %s3705_s28  }
  0x70   : > { %s35_s12 = ssub.s32 %s3705_s28, %s3935_s16  ;;  %s38_s23 = sadd.s32 1, %s3701_s27 }
  0x71   : > { %p36_p8 = scmp.eq.s32.totalorder %s35_s12, 0  ;;  %p45_p1 = scmp.ne.s32.totalorder %s3701_s27, %s3697_s26 }
  0x72   : > { %p46_p3 = scmp.eq.s32.totalorder %s3705_s28, 0  ;;  %p51_p11 = scmp.ne.s32.totalorder %s3697_s26, %s3693_s25 }
  0x73   : > { %s3946_s24 = scalar_select %p36_p8, %s3701_s27, %s38_s23  }
  0x74   : > { %p3948_p12 = por %p46_p3, %p45_p1  ;;  %p4316_p13 = scmp.eq.s32.totalorder %s3811_s14, 0 }
  0x75   : > { %p327_p0 = scmp.eq.s32.totalorder %s3811_s14, 1  ;;  %p333_p2 = scmp.eq.s32.totalorder %s2753_s13, 1 }
  0x76   : > { %p3954_p6 = por %p4316_p13, %p51_p11  ;;  %p3223_p5 = scmp.lt.s32.totalorder %s3705_s28, 2 }
  0x77   : > { %s429_s7 = sand.u32 1, %s3701_s27   ;;  %p3961_p7 = por %p327_p0, %p45_p1 }
  0x78   : > { %p3965_p9 = por %p333_p2, %p51_p11  ;;  %s2760_s19 = sshll.u32 %s429_s7, 3 }
  0x79   : > { %s4318_s22 = scalar_select %p3961_p7, 1, 0 }
  0x7a   : > { %s4319_s17 = scalar_select %p3965_p9, 1, 0 }
  0x7b   : > { %s2761_s21 = sshll.u32 %s3705_s28, 7  ;;  %s433_s10 = scalar_lea.vmem [#allocation3], %s2760_s19 }
  0x7c   : > { %s3973_s18 = scalar_lea.hbm %s4287_s0, %s2761_s21  ;;  %s440_s13 = sshll.u32 %s433_s10, 4  ;;  %s3975_s13 = int_to_ptr.vmem [resolvable:$true] %s440_s13 }
  0x7d   : > { %p3979_p4 = pnand %p3223_p5, %p3948_p12  ;;  %s430_s23 = scalar_lea.sflag [#allocation4], %s429_s7 }
  0x7e   : > { %s3601_s3 = scalar_lea.hbm %s3973_s18, 128  ;;  %s3606_s30 = scalar_lea.hbm %s4287_s0, 256 }
  0x7f   : > { %p3602_p10 = scmp.ne.s32.totalorder %s3973_s18, %s3601_s3  ;;  %p3603_p8 = pneg %p3979_p4 }
  0x80   : > { %p3607_p11 = scmp.lt.u32.totalorder %s3973_s18, %s4287_s0  ;;  %p3608_p12 = scmp.lt.u32.totalorder %s3606_s30, %s3601_s3 }
  0x81   : > { %p3604_p1 = pnand %p3603_p8, %p3602_p10  ;;  %p3610_p0 = scmp.lt.u32.totalorder %s3601_s3, %s3973_s18 }
  0x82   : > { %p3609_p13 = por %p3608_p12, %p3607_p11 }
  0x83   : > { %p3605_p3 = pneg %p3604_p1 }
  0x84   : > { %p3611_p2 = por %p3610_p0, %p3609_p13 }
  0x86   : > { %p3612_p5 = pnand %p3611_p2, %p3605_p3 }
  0x88   : > { %3615 = shalt.err (!%p3612_p5)
}
  0x89   : > { %s3616_s7 = scalar_lea.vmem %s3975_s13, 128  ;;  %s3715_s10 = smov [#allocation3]  }
  0x8a   : > { %p3617_p10 = scmp.ne.s32.totalorder %s3975_s13, %s3616_s7  ;;  %s3621_s19 = sshll.u32 %s3715_s10, 4  ;;  %s3622_s19 = int_to_ptr.vmem [resolvable:$false] %s3621_s19 }
  0x8b   : > { %s3623_s21 = scalar_lea.vmem %s3622_s19, 256  ;;  %p3624_p7 = scmp.lt.s32.totalorder %s3975_s13, %s3622_s19 }
  0x8c   : > { %p3619_p1 = pnand %p3617_p10, %p3603_p8  ;;  %p3625_p11 = scmp.lt.s32.totalorder %s3623_s21, %s3616_s7 }
  0x8e   : > { %p3620_p9 = pneg %p3619_p1  ;;  %p3626_p12 = por %p3625_p11, %p3624_p7 }
  0x90   : > { %p3627_p13 = pnand %p3626_p12, %p3620_p9 }
  0x92   : > { %3630 = shalt.err (!%p3627_p13)
}
  0x93   : > { %3214 = dma.hbm_to_vmem [thread:$0]  (!%p3979_p4), %s3973_s18, 128, %s3975_s13, %s430_s23  }
  0x94   : > { %p4321_p3 = scmp.ne.s32.totalorder %s4311_s15, 0 }
  0x95   : > { %s4011_s3 = sand.u32 (!%p4321_p3), 1, %s3697_s26  }
  0x96   : > { %449 = sbr.rel (%p4321_p3) target bundleno = 4239 (0x108f), region = 72  ;;  %s2763_s30 = sshll.u32 (!%p4321_p3), %s4011_s3, 3 }
  0x97   : > { %s452_s29 = scalar_lea.sflag (!%p4321_p3), [#allocation4], %s4011_s3  ;;  %s4017_s20 = scalar_lea.vmem (!%p4321_p3), [#allocation3], %s2763_s30 }
  0x9d   : > { %3676 = dma.done.wait (%p3954_p6), %s452_s29, 128  }
  0x9e   : > { %3678 = vsyncadd (%p3954_p6), %s452_s29, 4294967168  ;;  %p4322_p7 = scmp.eq.s32.totalorder %s3811_s14, 0 }
  0xa0   : > { %3680 = dma.done.wait (%p4322_p7), [#allocation7], 16384   ;;  %p4323_p9 = pmov %p4322_p7 }
  0xa1   : > { %p4324_p4 = pmov %p4322_p7 }
  0xa2   : > { %3682 = vsyncadd (%p4323_p9), [#allocation7], 4294950912 }
  0xa3   : > { %3684 = dma.done.wait (%p4324_p4), [#allocation10], 2048   ;;  %p4325_p8 = pmov %p4324_p4 }
  0xa4   : > { %v4032_v0 = vld [vmem:[%s4017_s20] sm:$0xff]  ;;  %v3716_v36 = vmov 0   ;;  %vm1656_vm0 = vcmask 1043456   ;;  %vm3718_vm1 = vmmov 0   ;;  %vm1640_vm2 = vcmask 64512   ;;  %s4326_s15 = sld [smem:[#allocation18_spill]] }
  0xa5   : > { %3686 = vsyncadd (%p4325_p8), [#allocation10], 4294965248  ;;  %518 = vadd.xlane.f32.xlu0 %v4032_v0  ;;  %v521_v1 = vmul.f32 %v4032_v0, %v4032_v0  ;;  %v3272_v2 = vld [vmem:[#allocation6 + $0x4] ss:$48 sps:$4 sm:$0xff]   ;;  %v3274_v3 = vld [vmem:[#allocation6 + $0xc] ss:$48 sps:$4 sm:$0xff]   ;;  %1218 = vmatprep.mubr.bf16.mxu0 %v3716_v36 }
  0xa6   : > { %v3276_v4 = vld [vmem:[#allocation6] ss:$48 sps:$4 sm:$0xff]   ;;  %v3277_v5 = vld [vmem:[#allocation6 + $0x8] ss:$48 sps:$4 sm:$0xff]   ;;  %1186 = vmatprep.subr.bf16.mxu0 %v3272_v2  ;;  %1227 = vmatprep.subr.bf16.mxu1 %v3274_v3  ;;  %v3278_v6 = vld [vmem:[#allocation6 + $0x64] ss:$48 sps:$4 sm:$0xff]  }
  0xa7   : > { %1187 = vmatpush1.bf16.msra.mxu0 %v3276_v4  ;;  %1228 = vmatpush1.bf16.msra.mxu1 %v3277_v5  ;;  %v3280_v7 = vld [vmem:[#allocation6 + $0x6c] ss:$48 sps:$4 sm:$0xff]   ;;  %v3282_v8 = vld [vmem:[#allocation6 + $0x60] ss:$48 sps:$4 sm:$0xff]   ;;  %v3283_v9 = vld [vmem:[#allocation6 + $0x68] ss:$48 sps:$4 sm:$0xff]  }
  0xa8   : > { %1188 = vmatprep.subr.bf16.mxu0 %v3278_v6  ;;  %1229 = vmatprep.subr.bf16.mxu1 %v3280_v7  ;;  %v3284_v10 = vld [vmem:[#allocation6 + $0xc4] ss:$48 sps:$4 sm:$0xff]   ;;  %v3286_v11 = vld [vmem:[#allocation6 + $0xcc] ss:$48 sps:$4 sm:$0xff]   ;;  %v3288_v12 = vld [vmem:[#allocation6 + $0xc0] ss:$48 sps:$4 sm:$0xff]  }
  0xa9   : > { %522 = vadd.xlane.f32.xlu0 %v521_v1  ;;  %v3289_v13 = vld [vmem:[#allocation6 + $0xc8] ss:$48 sps:$4 sm:$0xff]   ;;  %v3290_v14 = vld [vmem:[#allocation6 + $0x124] ss:$48 sps:$4 sm:$0xff]   ;;  %v3292_v15 = vld [vmem:[#allocation6 + $0x12c] ss:$48 sps:$4 sm:$0xff]   ;;  %1259 = vmatprep.mubr.bf16.mxu1 %v3716_v36 }
  0xaa   : > { %v3294_v16 = vld [vmem:[#allocation6 + $0x120] ss:$48 sps:$4 sm:$0xff]   ;;  %v3295_v17 = vld [vmem:[#allocation6 + $0x128] ss:$48 sps:$4 sm:$0xff]   ;;  %v3296_v18 = vld [vmem:[#allocation6 + $0x184] ss:$48 sps:$4 sm:$0xff]  }
  0xab   : > { %1189 = vmatpush1.bf16.msra.mxu0 %v3282_v8  ;;  %1230 = vmatpush1.bf16.msra.mxu1 %v3283_v9  ;;  %v3298_v19 = vld [vmem:[#allocation6 + $0x18c] ss:$48 sps:$4 sm:$0xff]   ;;  %v3300_v20 = vld [vmem:[#allocation6 + $0x180] ss:$48 sps:$4 sm:$0xff]   ;;  %v3301_v21 = vld [vmem:[#allocation6 + $0x188] ss:$48 sps:$4 sm:$0xff]  }
  0xac   : > { %1190 = vmatprep.subr.bf16.mxu0 %v3284_v10  ;;  %1231 = vmatprep.subr.bf16.mxu1 %v3286_v11  ;;  %v3302_v22 = vld [vmem:[#allocation6 + $0x1e4] ss:$48 sps:$4 sm:$0xff]   ;;  %v3304_v23 = vld [vmem:[#allocation6 + $0x1ec] ss:$48 sps:$4 sm:$0xff]   ;;  %v3306_v24 = vld [vmem:[#allocation6 + $0x1e0] ss:$48 sps:$4 sm:$0xff]  }
  0xad   : > { %v3307_v25 = vld [vmem:[#allocation6 + $0x1e8] ss:$48 sps:$4 sm:$0xff]   ;;  %v3308_v26 = vld [vmem:[#allocation6 + $0x244] ss:$48 sps:$4 sm:$0xff]   ;;  %v3310_v27 = vld [vmem:[#allocation6 + $0x24c] ss:$48 sps:$4 sm:$0xff]  }
  0xae   : > { %v3312_v28 = vld [vmem:[#allocation6 + $0x240] ss:$48 sps:$4 sm:$0xff]   ;;  %v3313_v29 = vld [vmem:[#allocation6 + $0x248] ss:$48 sps:$4 sm:$0xff]   ;;  %v3314_v30 = vld [vmem:[#allocation6 + $0x2a4] ss:$48 sps:$4 sm:$0xff]  }
  0xaf   : > { %1191 = vmatpush1.bf16.msra.mxu0 %v3288_v12  ;;  %1232 = vmatpush1.bf16.msra.mxu1 %v3289_v13  ;;  %v3316_v31 = vld [vmem:[#allocation6 + $0x2ac] ss:$48 sps:$4 sm:$0xff]   ;;  %v3318_v32 = vld [vmem:[#allocation6 + $0x2a0] ss:$48 sps:$4 sm:$0xff]   ;;  %v3319_v33 = vld [vmem:[#allocation6 + $0x2a8] ss:$48 sps:$4 sm:$0xff]  }
  0xb0   : > { %1192 = vmatprep.subr.bf16.mxu0 %v3290_v14  ;;  %1233 = vmatprep.subr.bf16.mxu1 %v3292_v15  ;;  %v3322_v34 = vld [vmem:[#allocation6 + $0x14] ss:$48 sps:$4 sm:$0xff]   ;;  %v3325_v35 = vld [vmem:[#allocation6 + $0x1c] ss:$48 sps:$4 sm:$0xff]   ;;  %v2769_v46 = vld [vmem:[%s4288_s1] ss:$0 sm:$0xff] }
  0xb1   : > { %v2770_v48 = vld [vmem:[%s4289_s2] ss:$0 sm:$0xff]  ;;  %v3323_v52 = vld [vmem:[#allocation6 + $0x18] ss:$48 sps:$4 sm:$0xff]   ;;  %v3328_v54 = vld [vmem:[#allocation6 + $0x74] ss:$48 sps:$4 sm:$0xff]  }
  0xb2   : > { %v3320_v51 = vld [vmem:[#allocation6 + $0x10] ss:$48 sps:$4 sm:$0xff]   ;;  %v3331_v55 = vld [vmem:[#allocation6 + $0x7c] ss:$48 sps:$4 sm:$0xff]   ;;  %v3329_v57 = vld [vmem:[#allocation6 + $0x78] ss:$48 sps:$4 sm:$0xff]  }
  0xb3   : > { %1193 = vmatpush1.bf16.msra.mxu0 %v3294_v16  ;;  %1234 = vmatpush1.bf16.msra.mxu1 %v3295_v17  ;;  %v3326_v56 = vld [vmem:[#allocation6 + $0x70] ss:$48 sps:$4 sm:$0xff]   ;;  %v3334_v58 = vld [vmem:[#allocation6 + $0xd4] ss:$48 sps:$4 sm:$0xff]   ;;  %v3337_v59 = vld [vmem:[#allocation6 + $0xdc] ss:$48 sps:$4 sm:$0xff]  }
  0xb4   : > { %1194 = vmatprep.subr.bf16.mxu0 %v3296_v18  ;;  %1235 = vmatprep.subr.bf16.mxu1 %v3298_v19  ;;  %v3332_v60 = vld [vmem:[#allocation6 + $0xd0] ss:$48 sps:$4 sm:$0xff]   ;;  %v3335_v61 = vld [vmem:[#allocation6 + $0xd8] ss:$48 sps:$4 sm:$0xff]   ;;  %v3340_v62 = vld [vmem:[#allocation6 + $0x134] ss:$48 sps:$4 sm:$0xff]  }
  0xb5   : > { %v3343_v63 = vld [vmem:[#allocation6 + $0x13c] ss:$48 sps:$4 sm:$0xff]   ;;  %v3341_v1 = vld [vmem:[#allocation6 + $0x138] ss:$48 sps:$4 sm:$0xff]   ;;  %v3346_v2 = vld [vmem:[#allocation6 + $0x194] ss:$48 sps:$4 sm:$0xff]  }
  0xb6   : > { %v3349_v3 = vld [vmem:[#allocation6 + $0x19c] ss:$48 sps:$4 sm:$0xff]   ;;  %v3344_v4 = vld [vmem:[#allocation6 + $0x190] ss:$48 sps:$4 sm:$0xff]   ;;  %v3347_v5 = vld [vmem:[#allocation6 + $0x198] ss:$48 sps:$4 sm:$0xff]  }
  0xb7   : > { %1195 = vmatpush1.bf16.msra.mxu0 %v3300_v20  ;;  %1236 = vmatpush1.bf16.msra.mxu1 %v3301_v21  ;;  %v3352_v6 = vld [vmem:[#allocation6 + $0x1f4] ss:$48 sps:$4 sm:$0xff]   ;;  %v3355_v7 = vld [vmem:[#allocation6 + $0x1fc] ss:$48 sps:$4 sm:$0xff]   ;;  %v3350_v8 = vld [vmem:[#allocation6 + $0x1f0] ss:$48 sps:$4 sm:$0xff]  }
  0xb8   : > { %1196 = vmatprep.subr.bf16.mxu0 %v3302_v22  ;;  %1237 = vmatprep.subr.bf16.mxu1 %v3304_v23  ;;  %v3353_v9 = vld [vmem:[#allocation6 + $0x1f8] ss:$48 sps:$4 sm:$0xff]   ;;  %v3358_v10 = vld [vmem:[#allocation6 + $0x254] ss:$48 sps:$4 sm:$0xff]   ;;  %v3361_v11 = vld [vmem:[#allocation6 + $0x25c] ss:$48 sps:$4 sm:$0xff]  }
  0xb9   : > { %v3356_v12 = vld [vmem:[#allocation6 + $0x250] ss:$48 sps:$4 sm:$0xff]   ;;  %v3359_v13 = vld [vmem:[#allocation6 + $0x258] ss:$48 sps:$4 sm:$0xff]   ;;  %v3364_v14 = vld [vmem:[#allocation6 + $0x2b4] ss:$48 sps:$4 sm:$0xff]  }
  0xba   : > { %v3367_v15 = vld [vmem:[#allocation6 + $0x2bc] ss:$48 sps:$4 sm:$0xff]   ;;  %v3362_v16 = vld [vmem:[#allocation6 + $0x2b0] ss:$48 sps:$4 sm:$0xff]   ;;  %v3365_v17 = vld [vmem:[#allocation6 + $0x2b8] ss:$48 sps:$4 sm:$0xff]  }
  0xbb   : > { %1197 = vmatpush1.bf16.msra.mxu0 %v3306_v24  ;;  %1238 = vmatpush1.bf16.msra.mxu1 %v3307_v25  ;;  %v3370_v18 = vld [vmem:[#allocation6 + $0x24] ss:$48 sps:$4 sm:$0xff]   ;;  %v3373_v19 = vld [vmem:[#allocation6 + $0x2c] ss:$48 sps:$4 sm:$0xff]   ;;  %v3368_v20 = vld [vmem:[#allocation6 + $0x20] ss:$48 sps:$4 sm:$0xff]  }
  0xbc   : > { %1198 = vmatprep.subr.bf16.mxu0 %v3308_v26  ;;  %1239 = vmatprep.subr.bf16.mxu1 %v3310_v27  ;;  %v3371_v21 = vld [vmem:[#allocation6 + $0x28] ss:$48 sps:$4 sm:$0xff]   ;;  %v3376_v22 = vld [vmem:[#allocation6 + $0x84] ss:$48 sps:$4 sm:$0xff]   ;;  %v3379_v23 = vld [vmem:[#allocation6 + $0x8c] ss:$48 sps:$4 sm:$0xff]  }
  0xbd   : > { %v3374_v24 = vld [vmem:[#allocation6 + $0x80] ss:$48 sps:$4 sm:$0xff]   ;;  %v3377_v25 = vld [vmem:[#allocation6 + $0x88] ss:$48 sps:$4 sm:$0xff]   ;;  %v3382_v26 = vld [vmem:[#allocation6 + $0xe4] ss:$48 sps:$4 sm:$0xff]  }
  0xbe   : > { %v3385_v27 = vld [vmem:[#allocation6 + $0xec] ss:$48 sps:$4 sm:$0xff]   ;;  %s4327_s13 = sld [smem:[#allocation19_spill]]  ;;  %s4328_s7 = sld [smem:[#allocation20_spill]] }
  0xbf   : > { %1199 = vmatpush1.bf16.msra.mxu0 %v3312_v28  ;;  %1240 = vmatpush1.bf16.msra.mxu1 %v3313_v29  ;;  %v3380_v28 = vld [vmem:[#allocation6 + $0xe0] ss:$48 sps:$4 sm:$0xff]   ;;  %v3383_v29 = vld [vmem:[#allocation6 + $0xe8] ss:$48 sps:$4 sm:$0xff]   ;;  %s4329_s21 = sld [smem:[#allocation21_spill]]  ;;  %s2925_s29 = sshll.u32 %s3811_s14, 7 }
  0xc0   : > { %1200 = vmatprep.subr.bf16.mxu0 %v3314_v30  ;;  %1241 = vmatprep.subr.bf16.mxu1 %v3316_v31  ;;  %v3388_v30 = vld [vmem:[#allocation6 + $0x144] ss:$48 sps:$4 sm:$0xff]   ;;  %v3391_v31 = vld [vmem:[#allocation6 + $0x14c] ss:$48 sps:$4 sm:$0xff]   ;;  %s2632_s14 = scalar_lea.sflag [#allocation5], %s4011_s3  ;;  %p4331_p0 = scmp.ne.s32.totalorder %s4318_s22, 0 }
  0xc1   : > { %s3719_s23 = smov [#allocation12]  }
  0xc3   : > { %1201 = vmatpush1.bf16.msra.mxu0 %v3318_v32  ;;  %1242 = vmatpush1.bf16.msra.mxu1 %v3319_v33  ;;  %v3386_v32 = vld [vmem:[#allocation6 + $0x140] ss:$48 sps:$4 sm:$0xff]   ;;  %v3389_v33 = vld [vmem:[#allocation6 + $0x148] ss:$48 sps:$4 sm:$0xff]  }
  0xc4   : > { %1268 = vmatprep.subr.bf16.mxu0 %v3322_v34  ;;  %1309 = vmatprep.subr.bf16.mxu1 %v3325_v35  ;;  %v3394_v34 = vld [vmem:[#allocation6 + $0x1a4] ss:$48 sps:$4 sm:$0xff]   ;;  %v3397_v35 = vld [vmem:[#allocation6 + $0x1ac] ss:$48 sps:$4 sm:$0xff]  }
 0x132   : > { %v519_v37 = vpop.xlane.xlu0 %518 }
 0x133   : > { %v520_v38 = vmul.f32 0.020833334, %v519_v37  ;;  %v3392_v37 = vld [vmem:[#allocation6 + $0x1a0] ss:$48 sps:$4 sm:$0xff]  }
 0x135   : > { %v525_v40 = vmul.f32 %v520_v38, %v520_v38  ;;  %v527_v44 = vsub.f32 %v4032_v0, %v520_v38  ;;  %v3338_v0 = vld [vmem:[#allocation6 + $0x130] ss:$48 sps:$4 sm:$0xff]   ;;  %v3400_v38 = vld [vmem:[#allocation6 + $0x204] ss:$48 sps:$4 sm:$0xff]  }
 0x136   : > { %v523_v39 = vpop.xlane.xlu0 %522 }
 0x137   : > { %v524_v41 = vmul.f32 0.020833334, %v523_v39  ;;  %v3403_v39 = vld [vmem:[#allocation6 + $0x20c] ss:$48 sps:$4 sm:$0xff]  }
 0x139   : > { %v526_v42 = vsub.f32 %v524_v41, %v525_v40  ;;  %v3398_v40 = vld [vmem:[#allocation6 + $0x200] ss:$48 sps:$4 sm:$0xff]   ;;  %v3401_v41 = vld [vmem:[#allocation6 + $0x208] ss:$48 sps:$4 sm:$0xff]  }
 0x13b   : > { %v528_v43 = vadd.f32 1e-05, %v526_v42  ;;  %v3406_v42 = vld [vmem:[#allocation6 + $0x264] ss:$48 sps:$4 sm:$0xff]  }
 0x13d   : > { %3464 = vrsqrt.f32 %v528_v43  ;;  %v3409_v43 = vld [vmem:[#allocation6 + $0x26c] ss:$48 sps:$4 sm:$0xff]  }
 0x147   : > { %v3465_v45 = vpop.eup %3464 }
 0x148   : > { %v530_v47 = vmul.f32 %v3465_v45, %v527_v44  ;;  %v3404_v44 = vld [vmem:[#allocation6 + $0x260] ss:$48 sps:$4 sm:$0xff]   ;;  %v3407_v45 = vld [vmem:[#allocation6 + $0x268] ss:$48 sps:$4 sm:$0xff]  }
 0x14a   : > { %v537_v49 = vmul.f32 %v2769_v46, %v530_v47  ;;  %v3412_v46 = vld [vmem:[#allocation6 + $0x2c4] ss:$48 sps:$4 sm:$0xff]   ;;  %v3415_v47 = vld [vmem:[#allocation6 + $0x2cc] ss:$48 sps:$4 sm:$0xff]  }
 0x14c   : > { %v544_v50 = vadd.f32 %v2770_v48, %v537_v49  ;;  %v3410_v48 = vld [vmem:[#allocation6 + $0x2c0] ss:$48 sps:$4 sm:$0xff]   ;;  %v3413_v49 = vld [vmem:[#allocation6 + $0x2c8] ss:$48 sps:$4 sm:$0xff]  }
 0x14e   : > { %v4046_v53 = vpack.c.bf16 %v544_v50, %v544_v50  ;;  %v3717_v50 = vmov 0.0  }
 0x150   : > { %1219 = vmatmul.mubr.bf16.vlgmr.msra.gmra.mrb[0].mxu0 %v4046_v53  ;;  %1260 = vmatmul.mubr.bf16.vlgmr.msra.gmra.mrb[0].mxu1 %v4046_v53 }
 0x151   : > { %1269 = vmatpush1.bf16.msra.mxu0 %v3320_v51  ;;  %1310 = vmatpush1.bf16.msra.mxu1 %v3323_v52  ;;  %v646_v51 = vlaneseq }
 0x152   : > { %1270 = vmatprep.subr.bf16.mxu0 %v3328_v54  ;;  %1311 = vmatprep.subr.bf16.mxu1 %v3331_v55  ;;  %v4066_v55 = vld [vmem:[%s4291_s4] sm:$0xff] }
 0x153   : > { %1300 = vmatprep.mubr.bf16.mxu0 %v3716_v36  ;;  %1341 = vmatprep.mubr.bf16.mxu1 %v3716_v36  ;;  %v4060_v52 = vshrl.u32 %v646_v51, 7 }
 0x155   : > { %1271 = vmatpush1.bf16.msra.mxu0 %v3326_v56  ;;  %1312 = vmatpush1.bf16.msra.mxu1 %v3329_v57  ;;  %v656_v54 = vsub.s32 2, %v4060_v52  ;;  %v652_v56 = vsub.s32 1, %v4060_v52  ;;  %v660_v57 = vsub.s32 3, %v4060_v52 }
 0x156   : > { %1272 = vmatprep.subr.bf16.mxu0 %v3334_v58  ;;  %1313 = vmatprep.subr.bf16.mxu1 %v3337_v59 }
 0x157   : > { %v653_v58 = vrot.slane %v4066_v55, %v652_v56  ;;  %v661_v59 = vrot.slane %v4066_v55, %v660_v57 }
 0x159   : > { %1273 = vmatpush1.bf16.msra.mxu0 %v3332_v60  ;;  %1314 = vmatpush1.bf16.msra.mxu1 %v3335_v61 }
 0x15a   : > { %1274 = vmatprep.subr.bf16.mxu0 %v3340_v62  ;;  %1315 = vmatprep.subr.bf16.mxu1 %v3343_v63 }
 0x15d   : > { %1275 = vmatpush1.bf16.msra.mxu0 %v3338_v0  ;;  %1316 = vmatpush1.bf16.msra.mxu1 %v3341_v1 }
 0x15e   : > { %1276 = vmatprep.subr.bf16.mxu0 %v3346_v2  ;;  %1317 = vmatprep.subr.bf16.mxu1 %v3349_v3 }
 0x161   : > { %1277 = vmatpush1.bf16.msra.mxu0 %v3344_v4  ;;  %1318 = vmatpush1.bf16.msra.mxu1 %v3347_v5 }
 0x162   : > { %1278 = vmatprep.subr.bf16.mxu0 %v3352_v6  ;;  %1319 = vmatprep.subr.bf16.mxu1 %v3355_v7  ;;  %v664_v7 = vsub.s32 4, %v4060_v52 }
 0x165   : > { %1279 = vmatpush1.bf16.msra.mxu0 %v3350_v8  ;;  %1320 = vmatpush1.bf16.msra.mxu1 %v3353_v9  ;;  %v665_v8 = vrot.slane %v4066_v55, %v664_v7 }
 0x166   : > { %1280 = vmatprep.subr.bf16.mxu0 %v3358_v10  ;;  %1321 = vmatprep.subr.bf16.mxu1 %v3361_v11 }
 0x169   : > { %1281 = vmatpush1.bf16.msra.mxu0 %v3356_v12  ;;  %1322 = vmatpush1.bf16.msra.mxu1 %v3359_v13 }
 0x16a   : > { %1282 = vmatprep.subr.bf16.mxu0 %v3364_v14  ;;  %1323 = vmatprep.subr.bf16.mxu1 %v3367_v15 }
 0x16d   : > { %1283 = vmatpush1.bf16.msra.mxu0 %v3362_v16  ;;  %1324 = vmatpush1.bf16.msra.mxu1 %v3365_v17 }
 0x16e   : > { %1350 = vmatprep.subr.bf16.mxu0 %v3370_v18  ;;  %1391 = vmatprep.subr.bf16.mxu1 %v3373_v19  ;;  %v643_v18 = vld [vmem:[%s4291_s4 + $0x8] sm:$0xf]  ;;  %v648_v19 = vsub.s32 0, %v4060_v52 }
 0x170   : > { %1301 = vmatmul.mubr.bf16.vlgmr.msra.gmra.mrb[4].mxu0 %v4046_v53  ;;  %1342 = vmatmul.mubr.bf16.vlgmr.msra.gmra.mrb[4].mxu1 %v4046_v53 }
 0x171   : > { %1351 = vmatpush1.bf16.msra.mxu0 %v3368_v20  ;;  %1392 = vmatpush1.bf16.msra.mxu1 %v3371_v21  ;;  %v681_v20 = vrot.slane %v643_v18, %v648_v19  ;;  %v689_v21 = vrot.slane %v643_v18, %v656_v54 }
 0x172   : > { %1352 = vmatprep.subr.bf16.mxu0 %v3376_v22  ;;  %1393 = vmatprep.subr.bf16.mxu1 %v3379_v23  ;;  %v685_v22 = vrot.slane %v643_v18, %v652_v56  ;;  %v693_v23 = vrot.slane %v643_v18, %v660_v57 }
 0x173   : > { %1382 = vmatprep.mubr.bf16.mxu0 %v3716_v36  ;;  %1423 = vmatprep.mubr.bf16.mxu1 %v3716_v36  ;;  %v3395_v36 = vld [vmem:[#allocation6 + $0x1a8] ss:$48 sps:$4 sm:$0xff]  }
 0x175   : > { %1353 = vmatpush1.bf16.msra.mxu0 %v3374_v24  ;;  %1394 = vmatpush1.bf16.msra.mxu1 %v3377_v25 }
 0x176   : > { %1354 = vmatprep.subr.bf16.mxu0 %v3382_v26  ;;  %1395 = vmatprep.subr.bf16.mxu1 %v3385_v27 }
 0x179   : > { %1355 = vmatpush1.bf16.msra.mxu0 %v3380_v28  ;;  %1396 = vmatpush1.bf16.msra.mxu1 %v3383_v29 }
 0x17a   : > { %1356 = vmatprep.subr.bf16.mxu0 %v3388_v30  ;;  %1397 = vmatprep.subr.bf16.mxu1 %v3391_v31 }
 0x17d   : > { %1357 = vmatpush1.bf16.msra.mxu0 %v3386_v32  ;;  %1398 = vmatpush1.bf16.msra.mxu1 %v3389_v33 }
 0x17e   : > { %1358 = vmatprep.subr.bf16.mxu0 %v3394_v34  ;;  %1399 = vmatprep.subr.bf16.mxu1 %v3397_v35 }
 0x181   : > { %1359 = vmatpush1.bf16.msra.mxu0 %v3392_v37  ;;  %1400 = vmatpush1.bf16.msra.mxu1 %v3395_v36 }
 0x182   : > { %1360 = vmatprep.subr.bf16.mxu0 %v3400_v38  ;;  %1401 = vmatprep.subr.bf16.mxu1 %v3403_v39 }
 0x185   : > { %1361 = vmatpush1.bf16.msra.mxu0 %v3398_v40  ;;  %1402 = vmatpush1.bf16.msra.mxu1 %v3401_v41 }
 0x186   : > { %1362 = vmatprep.subr.bf16.mxu0 %v3406_v42  ;;  %1403 = vmatprep.subr.bf16.mxu1 %v3409_v43 }
 0x189   : > { %1363 = vmatpush1.bf16.msra.mxu0 %v3404_v44  ;;  %1404 = vmatpush1.bf16.msra.mxu1 %v3407_v45 }
 0x18a   : > { %1364 = vmatprep.subr.bf16.mxu0 %v3412_v46  ;;  %1405 = vmatprep.subr.bf16.mxu1 %v3415_v47 }
 0x18d   : > { %1365 = vmatpush1.bf16.msra.mxu0 %v3410_v48  ;;  %1406 = vmatpush1.bf16.msra.mxu1 %v3413_v49 }
 0x18e   : > { %3054 = vmatprep.subr.bf16.mxu1 %v3717_v50  ;;  %3034 = vmatprep.subr.bf16.mxu0 %v3717_v50 }
 0x190   : > { %1383 = vmatmul.mubr.bf16.vlgmr.msra.gmra.mrb[8].mxu0 %v4046_v53  ;;  %1424 = vmatmul.mubr.bf16.vlgmr.msra.gmra.mrb[8].mxu1 %v4046_v53  ;;  %v657_v53 = vrot.slane %v4066_v55, %v656_v54 }
 0x191   : > { %3050 = vmatprep.mubr.msk.bf16.mxu0 %vm3718_vm1, %v3717_v50  ;;  %3056 = vmatprep.mubr.msk.bf16.mxu1 %vm3718_vm1, %v3717_v50 }
 0x223   : > { %v4073_v60 = vpop.f32.mrb[0].mxu0  ;;  %v1261_v61 = vpop.f32.mrb[0].mxu1 }
 0x224   : > { %v4075_v62 = vadd.f32 %v1261_v61, %v657_v53  ;;  %v1222_v63 = vpop.f32.mrb[1].mxu0  ;;  %v1263_v0 = vpop.f32.mrb[1].mxu1 }
 0x225   : > { %v4077_v1 = vadd.f32 %v1222_v63, %v653_v58  ;;  %v4079_v2 = vadd.f32 %v1263_v0, %v661_v59  ;;  %v1224_v3 = vpop.f32.mrb[2].mxu0  ;;  %v1265_v4 = vpop.f32.mrb[2].mxu1 }
 0x226   : > { %v1225_v5 = vpop.f32.mrb[3].mxu0  ;;  %v1266_v6 = vpop.f32.mrb[3].mxu1 }
 0x243   : > { %v1302_v9 = vpop.f32.mrb[4].mxu0  ;;  %v4083_v10 = vpop.f32.mrb[4].mxu1 }
 0x244   : > { %v4085_v11 = vpop.f32.mrb[5].mxu0  ;;  %v4087_v12 = vpop.f32.mrb[5].mxu1  ;;  %v1303_v13 = vadd.f32 %v1302_v9, %v665_v8  ;;  %v649_v8 = vrot.slane %v4066_v55, %v648_v19 }
 0x245   : > { %v1306_v14 = vpop.f32.mrb[6].mxu0  ;;  %v1347_v15 = vpop.f32.mrb[6].mxu1 }
 0x246   : > { %v1307_v16 = vpop.f32.mrb[7].mxu0  ;;  %v1348_v17 = vpop.f32.mrb[7].mxu1  ;;  %1436 = vxpose.xlu1.b32.start.end [1/1] (short) %v1303_v13, 128  ;;  %v1221_v13 = vadd.f32 %v4073_v60, %v649_v8 }
 0x248   : > { %v1432_v16 = vpack.c.bf16 %v1221_v13, %v1221_v13 }
 0x263   : > { %v1384_v24 = vpop.f32.mrb[8].mxu0  ;;  %v1425_v25 = vpop.f32.mrb[8].mxu1 }
 0x264   : > { %v1385_v26 = vadd.f32 %v1384_v24, %v681_v20  ;;  %v1426_v27 = vadd.f32 %v1425_v25, %v689_v21  ;;  %v1386_v28 = vpop.f32.mrb[9].mxu0  ;;  %v1427_v29 = vpop.f32.mrb[9].mxu1 }
 0x265   : > { %v1387_v30 = vadd.f32 %v1386_v28, %v685_v22  ;;  %v1428_v31 = vadd.f32 %v1427_v29, %v693_v23  ;;  %v1388_v32 = vpop.f32.mrb[10].mxu0  ;;  %v1429_v33 = vpop.f32.mrb[10].mxu1 }
 0x266   : > { %v1596_v34 = vpack.c.bf16 %v1385_v26, %v1385_v26  ;;  %v1598_v35 = vpack.c.bf16 %v1426_v27, %v1426_v27  ;;  %v1389_v37 = vpop.f32.mrb[11].mxu0  ;;  %v1430_v36 = vpop.f32.mrb[11].mxu1  ;;  %v668_v26 = vsub.s32 5, %v4060_v52 }
 0x267   : > { %v1597_v38 = vpack.c.bf16 %v1387_v30, %v1387_v30  ;;  %v1599_v39 = vpack.c.bf16 %v1428_v31, %v1428_v31 }
 0x268   : > { %v1658_v40 = vsel %vm1656_vm0, %v1596_v34, 0  ;;  %v4095_v41 = vsel %vm1656_vm0, %v1598_v35, 0  ;;  %v669_v27 = vrot.slane %v4066_v55, %v668_v26 }
 0x269   : > { %v1757_v42 = vsel %vm1656_vm0, %v1597_v38, 0  ;;  %v4097_v43 = vsel %vm1656_vm0, %v1599_v39, 0  ;;  %3055 = vmatpush3.bf16.msra.mxu1 %v1658_v40 }
 0x26a   : > { %3060 = vmatprep.subr.bf16.mxu1 %v3717_v50  ;;  %v1305_v28 = vadd.f32 %v4085_v11, %v669_v27 }
 0x2c6   : > { %v1452_v44 = vpop.trf.xlu1 }
 0x2ca   : > { %v1453_v45 = vpop.trf.xlu1 }
 0x2cb   : > { %v1564_v46 = vpack.c.bf16 %v1453_v45, %v1452_v44 }
 0x2cd   : > { %3035 = vmatpush3.bf16.msra.mxu0 %v1564_v46 }
 0x2ce   : > { %v1454_v47 = vpop.trf.xlu1  ;;  %3036 = vmatprep.subr.bf16.mxu0 %v3717_v50 }
 0x2d2   : > { %v1455_v48 = vpop.trf.xlu1 }
 0x2d3   : > { %v1565_v49 = vpack.c.bf16 %v1455_v48, %v1454_v47 }
 0x2d5   : > { %3037 = vmatpush3.bf16.msra.mxu0 %v1565_v49 }
 0x2d6   : > { %v1456_v51 = vpop.trf.xlu1  ;;  %3038 = vmatprep.subr.bf16.mxu0 %v3717_v50 }
 0x2da   : > { %v1457_v54 = vpop.trf.xlu1 }
 0x2db   : > { %v1566_v56 = vpack.c.bf16 %v1457_v54, %v1456_v51 }
 0x2dd   : > { %3039 = vmatpush3.bf16.msra.mxu0 %v1566_v56 }
 0x2de   : > { %v1458_v57 = vpop.trf.xlu1  ;;  %3040 = vmatprep.subr.bf16.mxu0 %v3717_v50 }
 0x2e2   : > { %v1459_v53 = vpop.trf.xlu1 }
 0x2e3   : > { %v1567_v58 = vpack.c.bf16 %v1459_v53, %v1458_v57 }
 0x2e5   : > { %3041 = vmatpush3.bf16.msra.mxu0 %v1567_v58 }
 0x2e6   : > { %v1460_v59 = vpop.trf.xlu1  ;;  %3042 = vmatprep.subr.bf16.mxu0 %v3717_v50 }
 0x2ea   : > { %v1461_v61 = vpop.trf.xlu1 }
 0x2eb   : > { %v1568_v63 = vpack.c.bf16 %v1461_v61, %v1460_v59 }
 0x2ed   : > { %3043 = vmatpush3.bf16.msra.mxu0 %v1568_v63  ;;  %v1433_v63 = vpack.c.bf16 %v4077_v1, %v4077_v1 }
 0x2ee   : > { %v1462_v0 = vpop.trf.xlu1  ;;  %3044 = vmatprep.subr.bf16.mxu0 %v3717_v50 }
 0x2f2   : > { %v1463_v3 = vpop.trf.xlu1 }
 0x2f3   : > { %v1569_v4 = vpack.c.bf16 %v1463_v3, %v1462_v0 }
 0x2f5   : > { %3045 = vmatpush3.bf16.msra.mxu0 %v1569_v4 }
 0x2f6   : > { %v1464_v5 = vpop.trf.xlu1  ;;  %3046 = vmatprep.subr.bf16.mxu0 %v3717_v50 }
 0x2fa   : > { %v1465_v6 = vpop.trf.xlu1 }
 0x2fb   : > { %v1570_v7 = vpack.c.bf16 %v1465_v6, %v1464_v5 }
 0x2fd   : > { %3047 = vmatpush3.bf16.msra.mxu0 %v1570_v7 }
 0x2fe   : > { %v1466_v9 = vpop.trf.xlu1  ;;  %3048 = vmatprep.subr.bf16.mxu0 %v3717_v50 }
 0x302   : > { %v1467_v14 = vpop.trf.xlu1 }
 0x303   : > { %v1571_v15 = vpack.c.bf16 %v1467_v14, %v1466_v9 }
 0x305   : > { %3049 = vmatpush3.bf16.msra.mxu0 %v1571_v15 }
 0x306   : > { %3080 = vmatprep.subr.bf16.mxu0 %v3717_v50 }
 0x308   : > { %3051 = vmatmul.mubr.bf16.vlgmr.msra.gmra.mrb[12].mxu0 %v1432_v16 }
 0x309   : > { %3081 = vmatpush3.bf16.msra.mxu0 %v1757_v42  ;;  %3082 = vmatprep.mubr.msk.bf16.mxu0 %vm3718_vm1, %v3717_v50 }
 0x30a   : > { %3086 = vmatprep.subr.bf16.mxu0 %v3717_v50 }
 0x3db   : > { %v1634_v17 = vpop.f32.mrb[12].mxu0 }
 0x3dc   : > { %v3052_v18 = vpop.f32.mrb[13].mxu0  ;;  %v1641_v19 = vsel %vm1640_vm2, %v1634_v17, -inf }
 0x3dd   : > { %1642 = vmax.xlane.f32.xlu1 %v1641_v19  ;;  %v1637_v60 = vpop.f32.mrb[14].mxu0 }
 0x3de   : > { %v3053_v20 = vpop.f32.mrb[15].mxu0 }
 0x46a   : > { %v1643_v21 = vpop.xlane.xlu1 %1642 }
 0x46b   : > { %v1644_v22 = vsub.f32 %v1634_v17, %v1643_v21  ;;  %v672_v17 = vsub.s32 6, %v4060_v52 }
 0x46d   : > { %v1645_v23 = vmul.f32 1.442695, %v1644_v22  ;;  %v673_v18 = vrot.slane %v4066_v55, %v672_v17 }
 0x46f   : > { %3466 = vpow2.f32 %v1645_v23  ;;  %v1344_v19 = vadd.f32 %v4083_v10, %v673_v18 }
 0x479   : > { %v3467_v24 = vpop.eup %3466 }
 0x47a   : > { %v1647_v25 = vsel %vm1640_vm2, %v3467_v24, 0.0 }
 0x47b   : > { %1648 = vadd.xlane.f32.xlu0 %v1647_v25 }
 0x4a8   : > { %1468 = vxpose.xlu0.b32.start.end [1/1] (short) %v1305_v28, 128 }
 0x508   : > { %v1649_v29 = vpop.xlane.xlu0 %1648 }
 0x509   : > { %3468 = vrcp.f32 %v1649_v29 }
 0x513   : > { %v3469_v30 = vpop.eup %3468 }
 0x514   : > { %v1651_v31 = vmul.f32 %v3469_v30, %v3467_v24 }
 0x516   : > { %v1652_v32 = vpack.c.bf16 %v1651_v31, %v1651_v31 }
 0x518   : > { %3057 = vmatmul.mubr.msk.bf16.vlgmr.msra.gmra.mrb[12].mxu1 %vm1640_vm2, %v1652_v32 }
 0x519   : > { %3076 = vmatprep.mubr.msk.bf16.mxu1 %vm3718_vm1, %v3717_v50 }
 0x528   : > { %v1484_v33 = vpop.trf.xlu0 }
 0x52c   : > { %v1485_v34 = vpop.trf.xlu0 }
 0x52d   : > { %v1572_v35 = vpack.c.bf16 %v1485_v34, %v1484_v33 }
 0x52f   : > { %3061 = vmatpush3.bf16.msra.mxu1 %v1572_v35 }
 0x530   : > { %v1486_v37 = vpop.trf.xlu0  ;;  %3062 = vmatprep.subr.bf16.mxu1 %v3717_v50 }
 0x534   : > { %v1487_v36 = vpop.trf.xlu0 }
 0x535   : > { %v1573_v11 = vpack.c.bf16 %v1487_v36, %v1486_v37 }
 0x537   : > { %3063 = vmatpush3.bf16.msra.mxu1 %v1573_v11 }
 0x538   : > { %v1488_v38 = vpop.trf.xlu0  ;;  %3064 = vmatprep.subr.bf16.mxu1 %v3717_v50 }
 0x53c   : > { %v1489_v39 = vpop.trf.xlu0 }
 0x53d   : > { %v1574_v40 = vpack.c.bf16 %v1489_v39, %v1488_v38 }
 0x53f   : > { %3065 = vmatpush3.bf16.msra.mxu1 %v1574_v40 }
 0x540   : > { %v1490_v42 = vpop.trf.xlu0  ;;  %3066 = vmatprep.subr.bf16.mxu1 %v3717_v50 }
 0x544   : > { %v1491_v44 = vpop.trf.xlu0 }
 0x545   : > { %v1575_v45 = vpack.c.bf16 %v1491_v44, %v1490_v42 }
 0x547   : > { %3067 = vmatpush3.bf16.msra.mxu1 %v1575_v45 }
 0x548   : > { %v1492_v46 = vpop.trf.xlu0  ;;  %3068 = vmatprep.subr.bf16.mxu1 %v3717_v50 }
 0x54c   : > { %v1493_v47 = vpop.trf.xlu0 }
 0x54d   : > { %v1576_v48 = vpack.c.bf16 %v1493_v47, %v1492_v46  ;;  %v1434_v47 = vpack.c.bf16 %v4075_v62, %v4075_v62 }
 0x54f   : > { %3069 = vmatpush3.bf16.msra.mxu1 %v1576_v48 }
 0x550   : > { %v1494_v49 = vpop.trf.xlu0  ;;  %3070 = vmatprep.subr.bf16.mxu1 %v3717_v50 }
 0x554   : > { %v1495_v51 = vpop.trf.xlu0 }
 0x555   : > { %v1577_v54 = vpack.c.bf16 %v1495_v51, %v1494_v49 }
 0x557   : > { %3071 = vmatpush3.bf16.msra.mxu1 %v1577_v54 }
 0x558   : > { %v1496_v56 = vpop.trf.xlu0  ;;  %3072 = vmatprep.subr.bf16.mxu1 %v3717_v50 }
 0x55c   : > { %v1497_v57 = vpop.trf.xlu0 }
 0x55d   : > { %v1578_v53 = vpack.c.bf16 %v1497_v57, %v1496_v56 }
 0x55f   : > { %3073 = vmatpush3.bf16.msra.mxu1 %v1578_v53 }
 0x560   : > { %v1498_v58 = vpop.trf.xlu0  ;;  %3074 = vmatprep.subr.bf16.mxu1 %v3717_v50 }
 0x564   : > { %v1499_v59 = vpop.trf.xlu0 }
 0x565   : > { %v1579_v61 = vpack.c.bf16 %v1499_v59, %v1498_v58 }
 0x567   : > { %3075 = vmatpush3.bf16.msra.mxu1 %v1579_v61 }
 0x568   : > { %3106 = vmatprep.subr.bf16.mxu1 %v3717_v50 }
 0x56a   : > { %3077 = vmatmul.mubr.bf16.vlgmr.msra.gmra.mrb[16].mxu1 %v1433_v63 }
 0x56b   : > { %3107 = vmatpush3.bf16.msra.mxu1 %v4095_v41  ;;  %3108 = vmatprep.mubr.msk.bf16.mxu1 %vm3718_vm1, %v3717_v50 }
 0x56c   : > { %3112 = vmatprep.subr.bf16.mxu1 %v3717_v50 }
 0x5eb   : > { %v4141_v0 = vpop.f32.mrb[12].mxu1 }
 0x5ec   : > { %v3058_v3 = vpop.f32.mrb[13].mxu1 }
 0x5ed   : > { %v1697_v4 = vpop.f32.mrb[14].mxu1 }
 0x5ee   : > { %v3059_v5 = vpop.f32.mrb[15].mxu1  ;;  %v676_v4 = vsub.s32 7, %v4060_v52 }
 0x5f0   : > { %v677_v5 = vrot.slane %v4066_v55, %v676_v4 }
 0x63d   : > { %v1735_v6 = vpop.f32.mrb[16].mxu1 }
 0x63e   : > { %v3078_v7 = vpop.f32.mrb[17].mxu1  ;;  %v1741_v8 = vsel %vm1640_vm2, %v1735_v6, -inf }
 0x63f   : > { %1742 = vmax.xlane.f32.xlu0 %v1741_v8  ;;  %v1738_v1 = vpop.f32.mrb[18].mxu1 }
 0x640   : > { %v3079_v9 = vpop.f32.mrb[19].mxu1 }
 0x6cc   : > { %v1743_v13 = vpop.xlane.xlu0 %1742 }
 0x6cd   : > { %v1744_v14 = vsub.f32 %v1735_v6, %v1743_v13  ;;  %v1346_v6 = vadd.f32 %v4087_v12, %v677_v5 }
 0x6cf   : > { %v1745_v41 = vmul.f32 1.442695, %v1744_v14 }
 0x6d1   : > { %3470 = vpow2.f32 %v1745_v41 }
 0x6db   : > { %v3471_v15 = vpop.eup %3470 }
 0x6dc   : > { %v1747_v16 = vsel %vm1640_vm2, %v3471_v15, 0.0 }
 0x6dd   : > { %1748 = vadd.xlane.f32.xlu1 %v1747_v16 }
 0x710   : > { %1500 = vxpose.xlu1.b32.start.end [1/1] (short) %v1344_v19, 128 }
 0x76a   : > { %v1749_v60 = vpop.xlane.xlu1 %1748 }
 0x76b   : > { %3472 = vrcp.f32 %v1749_v60 }
 0x775   : > { %v3473_v20 = vpop.eup %3472 }
 0x776   : > { %v1751_v21 = vmul.f32 %v3473_v20, %v3471_v15 }
 0x778   : > { %v1752_v22 = vpack.c.bf16 %v1751_v21, %v1751_v21 }
 0x77a   : > { %3083 = vmatmul.mubr.msk.bf16.vlgmr.msra.gmra.mrb[16].mxu0 %vm1640_vm2, %v1752_v22 }
 0x77b   : > { %3102 = vmatprep.mubr.msk.bf16.mxu0 %vm3718_vm1, %v3717_v50 }
 0x790   : > { %v1516_v23 = vpop.trf.xlu1 }
 0x794   : > { %v1517_v24 = vpop.trf.xlu1 }
 0x795   : > { %v1580_v25 = vpack.c.bf16 %v1517_v24, %v1516_v23 }
 0x797   : > { %3087 = vmatpush3.bf16.msra.mxu0 %v1580_v25 }
 0x798   : > { %v1518_v26 = vpop.trf.xlu1  ;;  %3088 = vmatprep.subr.bf16.mxu0 %v3717_v50 }
 0x79c   : > { %v1519_v27 = vpop.trf.xlu1 }
 0x79d   : > { %v1581_v10 = vpack.c.bf16 %v1519_v27, %v1518_v26 }
 0x79f   : > { %3089 = vmatpush3.bf16.msra.mxu0 %v1581_v10 }
 0x7a0   : > { %v1520_v28 = vpop.trf.xlu1  ;;  %3090 = vmatprep.subr.bf16.mxu0 %v3717_v50 }
 0x7a4   : > { %v1521_v29 = vpop.trf.xlu1 }
 0x7a5   : > { %v1582_v30 = vpack.c.bf16 %v1521_v29, %v1520_v28 }
 0x7a7   : > { %3091 = vmatpush3.bf16.msra.mxu0 %v1582_v30 }
 0x7a8   : > { %v1522_v31 = vpop.trf.xlu1  ;;  %3092 = vmatprep.subr.bf16.mxu0 %v3717_v50 }
 0x7ac   : > { %v1523_v32 = vpop.trf.xlu1 }
 0x7ad   : > { %v1583_v33 = vpack.c.bf16 %v1523_v32, %v1522_v31  ;;  %v1435_v31 = vpack.c.bf16 %v4079_v2, %v4079_v2 }
 0x7af   : > { %3093 = vmatpush3.bf16.msra.mxu0 %v1583_v33 }
 0x7b0   : > { %v1524_v34 = vpop.trf.xlu1  ;;  %3094 = vmatprep.subr.bf16.mxu0 %v3717_v50 }
 0x7b4   : > { %v1525_v35 = vpop.trf.xlu1 }
 0x7b5   : > { %v1584_v37 = vpack.c.bf16 %v1525_v35, %v1524_v34 }
 0x7b7   : > { %3095 = vmatpush3.bf16.msra.mxu0 %v1584_v37 }
 0x7b8   : > { %v1526_v36 = vpop.trf.xlu1  ;;  %3096 = vmatprep.subr.bf16.mxu0 %v3717_v50 }
 0x7bc   : > { %v1527_v11 = vpop.trf.xlu1 }
 0x7bd   : > { %v1585_v38 = vpack.c.bf16 %v1527_v11, %v1526_v36 }
 0x7bf   : > { %3097 = vmatpush3.bf16.msra.mxu0 %v1585_v38 }
 0x7c0   : > { %v1528_v39 = vpop.trf.xlu1  ;;  %3098 = vmatprep.subr.bf16.mxu0 %v3717_v50 }
 0x7c4   : > { %v1529_v40 = vpop.trf.xlu1 }
 0x7c5   : > { %v1586_v42 = vpack.c.bf16 %v1529_v40, %v1528_v39 }
 0x7c7   : > { %3099 = vmatpush3.bf16.msra.mxu0 %v1586_v42 }
 0x7c8   : > { %v1530_v44 = vpop.trf.xlu1  ;;  %3100 = vmatprep.subr.bf16.mxu0 %v3717_v50 }
 0x7cc   : > { %v1531_v45 = vpop.trf.xlu1 }
 0x7cd   : > { %v1587_v46 = vpack.c.bf16 %v1531_v45, %v1530_v44 }
 0x7cf   : > { %3101 = vmatpush3.bf16.msra.mxu0 %v1587_v46  ;;  %v3416_v46 = vld [vmem:[#allocation8 + $0x40] sm:$0xff]  }
 0x7d0   : > { %3132 = vmatprep.subr.bf16.mxu0 %v3717_v50 }
 0x7d2   : > { %3103 = vmatmul.mubr.bf16.vlgmr.msra.gmra.mrb[20].mxu0 %v1434_v47  ;;  %v3432_v47 = vld [vmem:[#allocation8 + $0xc0] sm:$0xff]  }
 0x7d3   : > { %3133 = vmatpush3.bf16.msra.mxu0 %v4097_v43  ;;  %3134 = vmatprep.mubr.msk.bf16.mxu0 %vm3718_vm1, %v3717_v50 }
 0x7d4   : > { %2972 = vmatprep.subr.bf16.mxu0 %v3416_v46  ;;  %v3451_v46 = vld [vmem:[#allocation9 + $0x18] sm:$0xff]  }
 0x84d   : > { %v4164_v48 = vpop.f32.mrb[16].mxu0 }
 0x84e   : > { %v3084_v49 = vpop.f32.mrb[17].mxu0 }
 0x84f   : > { %v1796_v51 = vpop.f32.mrb[18].mxu0  ;;  %v3433_v49 = vld [vmem:[#allocation8 + $0x80] sm:$0xff]  }
 0x850   : > { %v3085_v54 = vpop.f32.mrb[19].mxu0  ;;  %v3434_v51 = vld [vmem:[#allocation8 + $0xc8] sm:$0xff]  }
 0x851   : > { %v3435_v54 = vld [vmem:[#allocation8 + $0x88] sm:$0xff]  }
 0x8a5   : > { %v1834_v56 = vpop.f32.mrb[20].mxu0 }
 0x8a6   : > { %v3104_v57 = vpop.f32.mrb[21].mxu0  ;;  %v1840_v53 = vsel %vm1640_vm2, %v1834_v56, -inf }
 0x8a7   : > { %1841 = vmax.xlane.f32.xlu1 %v1840_v53  ;;  %v1837_v58 = vpop.f32.mrb[22].mxu0  ;;  %v3437_v57 = vld [vmem:[#allocation8 + $0x90] sm:$0xff]   ;;  %v3438_v53 = vld [vmem:[#allocation8 + $0xd8] sm:$0xff]  }
 0x8a8   : > { %v3105_v62 = vpop.f32.mrb[23].mxu0  ;;  %v3439_v58 = vld [vmem:[#allocation8 + $0x98] sm:$0xff]  }
 0x8a9   : > { %v3440_v62 = vld [vmem:[#allocation8 + $0xe0] sm:$0xff]  }
 0x934   : > { %v1842_v59 = vpop.xlane.xlu1 %1841 }
 0x935   : > { %v1843_v61 = vsub.f32 %v1834_v56, %v1842_v59  ;;  %v3436_v56 = vld [vmem:[#allocation8 + $0xd0] sm:$0xff]   ;;  %v3441_v59 = vld [vmem:[#allocation8 + $0xa0] sm:$0xff]  }
 0x937   : > { %v1844_v63 = vmul.f32 1.442695, %v1843_v61  ;;  %v3442_v61 = vld [vmem:[#allocation8 + $0xe8] sm:$0xff]  }
 0x939   : > { %3474 = vpow2.f32 %v1844_v63  ;;  %v3443_v63 = vld [vmem:[#allocation8 + $0xa8] sm:$0xff]  }
 0x943   : > { %v3475_v43 = vpop.eup %3474 }
 0x944   : > { %v1846_v3 = vsel %vm1640_vm2, %v3475_v43, 0.0 }
 0x945   : > { %1847 = vadd.xlane.f32.xlu0 %v1846_v3  ;;  %v3445_v3 = vld [vmem:[#allocation8 + $0xb0] sm:$0xff]  }
 0x972   : > { %1532 = vxpose.xlu0.b32.start.end [1/1] (short) %v1346_v6, 128 }
 0x9d2   : > { %v1848_v7 = vpop.xlane.xlu0 %1847 }
 0x9d3   : > { %3476 = vrcp.f32 %v1848_v7  ;;  %v3417_v7 = vld [vmem:[#allocation8] sm:$0xff]  }
 0x9dd   : > { %v3477_v8 = vpop.eup %3476 }
 0x9de   : > { %v1850_v1 = vmul.f32 %v3477_v8, %v3475_v43  ;;  %v3444_v43 = vld [vmem:[#allocation8 + $0xf0] sm:$0xff]  }
 0x9e0   : > { %v1851_v9 = vpack.c.bf16 %v1850_v1, %v1850_v1  ;;  %v3418_v1 = vld [vmem:[#allocation8 + $0x48] sm:$0xff]  }
 0x9e2   : > { %3109 = vmatmul.mubr.msk.bf16.vlgmr.msra.gmra.mrb[20].mxu1 %vm1640_vm2, %v1851_v9  ;;  %v2003_v9 = vpack.c.bf16 %v4164_v48, %v4164_v48  ;;  %v3427_v48 = vld [vmem:[#allocation8 + $0x28] sm:$0xff]  }
 0x9e3   : > { %3128 = vmatprep.mubr.msk.bf16.mxu1 %vm3718_vm1, %v3717_v50 }
 0x9f2   : > { %v1548_v13 = vpop.trf.xlu0 }
 0x9f6   : > { %v1549_v14 = vpop.trf.xlu0 }
 0x9f7   : > { %v1588_v41 = vpack.c.bf16 %v1549_v14, %v1548_v13  ;;  %v3419_v13 = vld [vmem:[#allocation8 + $0x8] sm:$0xff]   ;;  %v3420_v14 = vld [vmem:[#allocation8 + $0x50] sm:$0xff]  }
 0x9f9   : > { %3113 = vmatpush3.bf16.msra.mxu1 %v1588_v41  ;;  %v3421_v41 = vld [vmem:[#allocation8 + $0x10] sm:$0xff]  }
 0x9fa   : > { %v1550_v52 = vpop.trf.xlu0  ;;  %3114 = vmatprep.subr.bf16.mxu1 %v3717_v50 }
 0x9fe   : > { %v1551_v55 = vpop.trf.xlu0 }
 0x9ff   : > { %v1589_v12 = vpack.c.bf16 %v1551_v55, %v1550_v52  ;;  %v3422_v52 = vld [vmem:[#allocation8 + $0x58] sm:$0xff]  }
 0xa00   : > { %v3423_v55 = vld [vmem:[#allocation8 + $0x18] sm:$0xff]  }
 0xa01   : > { %3115 = vmatpush3.bf16.msra.mxu1 %v1589_v12  ;;  %v3424_v12 = vld [vmem:[#allocation8 + $0x60] sm:$0xff]  }
 0xa02   : > { %v1552_v15 = vpop.trf.xlu0  ;;  %3116 = vmatprep.subr.bf16.mxu1 %v3717_v50 }
 0xa06   : > { %v1553_v16 = vpop.trf.xlu0 }
 0xa07   : > { %v1590_v17 = vpack.c.bf16 %v1553_v16, %v1552_v15  ;;  %v3425_v15 = vld [vmem:[#allocation8 + $0x20] sm:$0xff]   ;;  %v3426_v16 = vld [vmem:[#allocation8 + $0x68] sm:$0xff]  }
 0xa09   : > { %3117 = vmatpush3.bf16.msra.mxu1 %v1590_v17  ;;  %v3428_v17 = vld [vmem:[#allocation8 + $0x70] sm:$0xff]  }
 0xa0a   : > { %v1554_v18 = vpop.trf.xlu0  ;;  %3118 = vmatprep.subr.bf16.mxu1 %v3717_v50 }
 0xa0e   : > { %v1555_v19 = vpop.trf.xlu0 }
 0xa0f   : > { %v1591_v60 = vpack.c.bf16 %v1555_v19, %v1554_v18  ;;  %v3429_v18 = vld [vmem:[#allocation8 + $0x30] sm:$0xff]   ;;  %v3430_v19 = vld [vmem:[#allocation8 + $0x78] sm:$0xff]  }
 0xa11   : > { %3119 = vmatpush3.bf16.msra.mxu1 %v1591_v60  ;;  %v3431_v60 = vld [vmem:[#allocation8 + $0x38] sm:$0xff]  }
 0xa12   : > { %v1556_v20 = vpop.trf.xlu0  ;;  %3120 = vmatprep.subr.bf16.mxu1 %v3717_v50 }
 0xa16   : > { %v1557_v21 = vpop.trf.xlu0 }
 0xa17   : > { %v1592_v22 = vpack.c.bf16 %v1557_v21, %v1556_v20  ;;  %v2002_v20 = vpack.c.bf16 %v4141_v0, %v4141_v0  ;;  %v3446_v21 = vld [vmem:[#allocation8 + $0xf8] sm:$0xff]  }
 0xa19   : > { %3121 = vmatpush3.bf16.msra.mxu1 %v1592_v22  ;;  %v3447_v22 = vld [vmem:[#allocation8 + $0xb8] sm:$0xff]  }
 0xa1a   : > { %v1558_v23 = vpop.trf.xlu0  ;;  %3122 = vmatprep.subr.bf16.mxu1 %v3717_v50 }
 0xa1e   : > { %v1559_v24 = vpop.trf.xlu0 }
 0xa1f   : > { %v1593_v25 = vpack.c.bf16 %v1559_v24, %v1558_v23 }
 0xa21   : > { %3123 = vmatpush3.bf16.msra.mxu1 %v1593_v25 }
 0xa22   : > { %v1560_v26 = vpop.trf.xlu0  ;;  %3124 = vmatprep.subr.bf16.mxu1 %v3717_v50 }
 0xa26   : > { %v1561_v27 = vpop.trf.xlu0 }
 0xa27   : > { %v1594_v10 = vpack.c.bf16 %v1561_v27, %v1560_v26 }
 0xa29   : > { %3125 = vmatpush3.bf16.msra.mxu1 %v1594_v10 }
 0xa2a   : > { %v1562_v28 = vpop.trf.xlu0  ;;  %3126 = vmatprep.subr.bf16.mxu1 %v3717_v50 }
 0xa2e   : > { %v1563_v29 = vpop.trf.xlu0 }
 0xa2f   : > { %v1595_v30 = vpack.c.bf16 %v1563_v29, %v1562_v28 }
 0xa31   : > { %3127 = vmatpush3.bf16.msra.mxu1 %v1595_v30 }
 0xa32   : > { %2994 = vmatprep.subr.bf16.mxu1 %v3432_v47  ;;  %v3452_v47 = vld [vmem:[#allocation9 + $0x20] sm:$0xff]  }
 0xa34   : > { %3129 = vmatmul.mubr.bf16.vlgmr.msra.gmra.mrb[24].mxu1 %v1435_v31 }
 0xa35   : > { %2995 = vmatpush3.bf16.msra.mxu1 %v3433_v49  ;;  %v3453_v49 = vld [vmem:[#allocation9 + $0x28] sm:$0xff]  }
 0xa36   : > { %2996 = vmatprep.subr.bf16.mxu1 %v3434_v51  ;;  %v3454_v51 = vld [vmem:[#allocation9 + $0x30] sm:$0xff]  }
 0xa39   : > { %2997 = vmatpush3.bf16.msra.mxu1 %v3435_v54  ;;  %v3455_v54 = vld [vmem:[#allocation9 + $0x38] sm:$0xff]  }
 0xa3a   : > { %2998 = vmatprep.subr.bf16.mxu1 %v3436_v56 }
 0xa3d   : > { %2999 = vmatpush3.bf16.msra.mxu1 %v3437_v57 }
 0xa3e   : > { %3000 = vmatprep.subr.bf16.mxu1 %v3438_v53 }
 0xa41   : > { %3001 = vmatpush3.bf16.msra.mxu1 %v3439_v58 }
 0xa42   : > { %3002 = vmatprep.subr.bf16.mxu1 %v3440_v62 }
 0xa45   : > { %3003 = vmatpush3.bf16.msra.mxu1 %v3441_v59 }
 0xa46   : > { %3004 = vmatprep.subr.bf16.mxu1 %v3442_v61 }
 0xa49   : > { %3005 = vmatpush3.bf16.msra.mxu1 %v3443_v63 }
 0xa4a   : > { %3006 = vmatprep.subr.bf16.mxu1 %v3444_v43 }
 0xa4d   : > { %3007 = vmatpush3.bf16.msra.mxu1 %v3445_v3  ;;  %v2904_v3 = vld [vmem:[%s4326_s15] ss:$0 sm:$0xff] }
 0xa4e   : > { %3008 = vmatprep.subr.bf16.mxu1 %v3446_v21 }
 0xa51   : > { %3009 = vmatpush3.bf16.msra.mxu1 %v3447_v22 }
 0xa52   : > { %3158 = vmatprep.subr.bf16.mxu1 %v3717_v50 }
 0xab5   : > { %v4183_v32 = vpop.f32.mrb[20].mxu1 }
 0xab6   : > { %v3110_v33 = vpop.f32.mrb[21].mxu1  ;;  %v2004_v26 = vpack.c.bf16 %v4183_v32, %v4183_v32  ;;  %v2871_v32 = vld [vmem:[%s4293_s6] ss:$0 sm:$0xff] }
 0xab7   : > { %v1895_v34 = vpop.f32.mrb[22].mxu1  ;;  %v3448_v33 = vld [vmem:[#allocation9] sm:$0xff]  }
 0xab8   : > { %v3111_v35 = vpop.f32.mrb[23].mxu1 }
 0xb07   : > { %v1933_v37 = vpop.f32.mrb[24].mxu1 }
 0xb08   : > { %v3130_v36 = vpop.f32.mrb[25].mxu1  ;;  %v1939_v11 = vsel %vm1640_vm2, %v1933_v37, -inf }
 0xb09   : > { %1940 = vmax.xlane.f32.xlu0 %v1939_v11  ;;  %v1936_v38 = vpop.f32.mrb[26].mxu1 }
 0xb0a   : > { %v3131_v39 = vpop.f32.mrb[27].mxu1 }
 0xb96   : > { %v1941_v40 = vpop.xlane.xlu0 %1940 }
 0xb97   : > { %v1942_v42 = vsub.f32 %v1933_v37, %v1941_v40  ;;  %v3488_v40 = vld [vmem:[%s4017_s20] sm:$0xff]  ;;  %s513_s20 = scalar_lea.vmem [#allocation12], %s2763_s30 }
 0xb98   : > { %s2645_s15 = sshll.u32 %s513_s20, 4  ;;  %s4245_s15 = int_to_ptr.vmem [resolvable:$true] %s2645_s15 }
 0xb99   : > { %v1943_v44 = vmul.f32 1.442695, %v1942_v42  ;;  %s3631_s30 = scalar_lea.vmem %s4245_s15, 128 }
 0xb9a   : > { %p3632_p6 = scmp.ne.s32.totalorder %s4245_s15, %s3631_s30 }
 0xb9b   : > { %3478 = vpow2.f32 %v1943_v44 }
 0xb9c   : > { %p3633_p2 = pnand %p3632_p6, %p4331_p0 }
 0xb9e   : > { %p3634_p5 = pneg %p3633_p2 }
 0xba5   : > { %v3479_v45 = vpop.eup %3478 }
 0xba6   : > { %v1945_v2 = vsel %vm1640_vm2, %v3479_v45, 0.0 }
 0xba7   : > { %1946 = vadd.xlane.f32.xlu1 %v1945_v2  ;;  %v3450_v2 = vld [vmem:[#allocation9 + $0x10] sm:$0xff]  }
 0xc34   : > { %v1947_v4 = vpop.xlane.xlu1 %1946 }
 0xc35   : > { %3480 = vrcp.f32 %v1947_v4 }
 0xc3f   : > { %v3481_v5 = vpop.eup %3480 }
 0xc40   : > { %v1949_v6 = vmul.f32 %v3481_v5, %v3479_v45  ;;  %v3449_v45 = vld [vmem:[#allocation9 + $0x8] sm:$0xff]   ;;  %v2905_v5 = vld [vmem:[%s4327_s13] ss:$0 sm:$0xff]  ;;  %s4330_s13 = sld [smem:[#allocation22_spill]] }
 0xc42   : > { %v1950_v8 = vpack.c.bf16 %v1949_v6, %v1949_v6 }
 0xc44   : > { %3135 = vmatmul.mubr.msk.bf16.vlgmr.msra.gmra.mrb[24].mxu0 %vm1640_vm2, %v1950_v8 }
 0xc45   : > { %2973 = vmatpush3.bf16.msra.mxu0 %v3417_v7  ;;  %2301 = vmatprep.mubr.bf16.mxu0 %v2003_v9  ;;  %v3457_v9 = vld [vmem:[#allocation11 + $0x8] sm:$0xff]  }
 0xc46   : > { %2974 = vmatprep.subr.bf16.mxu0 %v3418_v1  ;;  %v3456_v1 = vld [vmem:[#allocation11] sm:$0xff]   ;;  %s4243_s12 = scalar_lea.hbm %s4330_s13, %s2925_s29 }
 0xc49   : > { %2975 = vmatpush3.bf16.msra.mxu0 %v3419_v13  ;;  %v3458_v13 = vld [vmem:[#allocation11 + $0x10] sm:$0xff]  }
 0xc4a   : > { %2976 = vmatprep.subr.bf16.mxu0 %v3420_v14  ;;  %v3459_v14 = vld [vmem:[#allocation11 + $0x18] sm:$0xff]  }
 0xc4d   : > { %2977 = vmatpush3.bf16.msra.mxu0 %v3421_v41  ;;  %v3460_v41 = vld [vmem:[#allocation11 + $0x20] sm:$0xff]  }
 0xc4e   : > { %2978 = vmatprep.subr.bf16.mxu0 %v3422_v52  ;;  %v3461_v52 = vld [vmem:[#allocation11 + $0x28] sm:$0xff]  }
 0xc51   : > { %2979 = vmatpush3.bf16.msra.mxu0 %v3423_v55  ;;  %v3462_v55 = vld [vmem:[#allocation11 + $0x30] sm:$0xff]  }
 0xc52   : > { %2980 = vmatprep.subr.bf16.mxu0 %v3424_v12  ;;  %v3463_v12 = vld [vmem:[#allocation11 + $0x38] sm:$0xff]  }
 0xc55   : > { %2981 = vmatpush3.bf16.msra.mxu0 %v3425_v15  ;;  %v2906_v15 = vld [vmem:[%s4328_s7] ss:$0 sm:$0xff]  ;;  %s3635_s7 = sshll.u32 %s3719_s23, 4  ;;  %s3636_s7 = int_to_ptr.vmem [resolvable:$false] %s3635_s7 }
 0xc56   : > { %2982 = vmatprep.subr.bf16.mxu0 %v3426_v16  ;;  %s3637_s10 = scalar_lea.vmem %s3636_s7, 256  ;;  %p3638_p10 = scmp.lt.s32.totalorder %s4245_s15, %s3636_s7 }
 0xc57   : > { %p3639_p1 = scmp.lt.s32.totalorder %s3637_s10, %s3631_s30 }
 0xc59   : > { %2983 = vmatpush3.bf16.msra.mxu0 %v3427_v48  ;;  %p3640_p11 = por %p3639_p1, %p3638_p10 }
 0xc5a   : > { %2984 = vmatprep.subr.bf16.mxu0 %v3428_v17 }
 0xc5b   : > { %p3641_p12 = pnand %p3640_p11, %p3634_p5 }
 0xc5d   : > { %2985 = vmatpush3.bf16.msra.mxu0 %v3429_v18 }
 0xc5e   : > { %2986 = vmatprep.subr.bf16.mxu0 %v3430_v19 }
 0xc61   : > { %2987 = vmatpush3.bf16.msra.mxu0 %v3431_v60 }
 0xc62   : > { %3138 = vmatprep.subr.bf16.mxu0 %v3717_v50 }
 0xc64   : > { %2302 = vmatmul.mubr.bf16.vlgmr.msra.gmra.mrb[28].mxu0 %v2002_v20 }
 0xc65   : > { %3154 = vmatprep.mubr.msk.bf16.mxu0 %vm3718_vm1, %v3717_v50  ;;  %3139 = vmatpush3.bf16.msra.mxu0 %v3448_v33 }
 0xc66   : > { %3140 = vmatprep.subr.bf16.mxu0 %v3717_v50 }
 0xc69   : > { %3141 = vmatpush3.bf16.msra.mxu0 %v3449_v45 }
 0xc6a   : > { %3142 = vmatprep.subr.bf16.mxu0 %v3717_v50 }
 0xc6d   : > { %3143 = vmatpush3.bf16.msra.mxu0 %v3450_v2 }
 0xc6e   : > { %3144 = vmatprep.subr.bf16.mxu0 %v3717_v50 }
 0xc71   : > { %3145 = vmatpush3.bf16.msra.mxu0 %v3451_v46 }
 0xc72   : > { %3146 = vmatprep.subr.bf16.mxu0 %v3717_v50 }
 0xc75   : > { %3147 = vmatpush3.bf16.msra.mxu0 %v3452_v47 }
 0xc76   : > { %3148 = vmatprep.subr.bf16.mxu0 %v3717_v50 }
 0xc79   : > { %3149 = vmatpush3.bf16.msra.mxu0 %v3453_v49 }
 0xc7a   : > { %3150 = vmatprep.subr.bf16.mxu0 %v3717_v50 }
 0xc7d   : > { %3151 = vmatpush3.bf16.msra.mxu0 %v3454_v51 }
 0xc7e   : > { %3152 = vmatprep.subr.bf16.mxu0 %v3717_v50 }
 0xc81   : > { %3153 = vmatpush3.bf16.msra.mxu0 %v3455_v54 }
 0xd17   : > { %v1991_v23 = vpop.f32.mrb[24].mxu0 }
 0xd18   : > { %v2005_v24 = vpack.c.bf16 %v1991_v23, %v1991_v23  ;;  %v3136_v25 = vpop.f32.mrb[25].mxu0 }
 0xd19   : > { %v1994_v27 = vpop.f32.mrb[26].mxu0 }
 0xd1a   : > { %v3137_v0 = vpop.f32.mrb[27].mxu0  ;;  %2341 = vmatprep.mubr.bf16.mxu1 %v2005_v24 }
 0xd1b   : > { %2342 = vmatmul.mubr.bf16.vlgmr.msra.gmra.mrb[28].mxu1 %v2004_v26 }
 0xd1c   : > { %3174 = vmatprep.mubr.msk.bf16.mxu1 %vm3718_vm1, %v3717_v50  ;;  %3159 = vmatpush3.bf16.msra.mxu1 %v3456_v1 }
 0xd1d   : > { %3160 = vmatprep.subr.bf16.mxu1 %v3717_v50 }
 0xd20   : > { %3161 = vmatpush3.bf16.msra.mxu1 %v3457_v9 }
 0xd21   : > { %3162 = vmatprep.subr.bf16.mxu1 %v3717_v50 }
 0xd24   : > { %3163 = vmatpush3.bf16.msra.mxu1 %v3458_v13 }
 0xd25   : > { %3164 = vmatprep.subr.bf16.mxu1 %v3717_v50 }
 0xd28   : > { %3165 = vmatpush3.bf16.msra.mxu1 %v3459_v14 }
 0xd29   : > { %3166 = vmatprep.subr.bf16.mxu1 %v3717_v50 }
 0xd2c   : > { %3167 = vmatpush3.bf16.msra.mxu1 %v3460_v41 }
 0xd2d   : > { %3168 = vmatprep.subr.bf16.mxu1 %v3717_v50 }
 0xd30   : > { %3169 = vmatpush3.bf16.msra.mxu1 %v3461_v52 }
 0xd31   : > { %3170 = vmatprep.subr.bf16.mxu1 %v3717_v50 }
 0xd34   : > { %3171 = vmatpush3.bf16.msra.mxu1 %v3462_v55 }
 0xd35   : > { %3172 = vmatprep.subr.bf16.mxu1 %v3717_v50 }
 0xd37   : > { %v2988_v10 = vpop.f32.mrb[28].mxu0 }
 0xd38   : > { %v2989_v28 = vpop.f32.mrb[29].mxu0  ;;  %3173 = vmatpush3.bf16.msra.mxu1 %v3463_v12 }
 0xd39   : > { %v2990_v29 = vadd.f32 %v2989_v28, %v2988_v10  ;;  %v2991_v30 = vpop.f32.mrb[30].mxu0 }
 0xd3a   : > { %v2992_v31 = vpop.f32.mrb[31].mxu0 }
 0xd3b   : > { %v2304_v37 = vadd.f32 %v2990_v29, %v2871_v32 }
 0xdee   : > { %v3010_v34 = vpop.f32.mrb[28].mxu1 }
 0xdef   : > { %v3011_v35 = vpop.f32.mrb[29].mxu1 }
 0xdf0   : > { %v3012_v36 = vadd.f32 %v3011_v35, %v3010_v34  ;;  %v3013_v11 = vpop.f32.mrb[30].mxu1 }
 0xdf1   : > { %v3014_v38 = vpop.f32.mrb[31].mxu1 }
 0xdf2   : > { %v2344_v39 = vadd.f32 %v3012_v36, %v2304_v37 }
 0xdf4   : > { %v4205_v42 = vadd.f32 %v3488_v40, %v2344_v39 }
 0xdf6   : > { %2352 = vadd.xlane.f32.xlu1 %v4205_v42  ;;  %v2355_v44 = vmul.f32 %v4205_v42, %v4205_v42 }
 0xdfa   : > { %2356 = vadd.xlane.f32.xlu1 %v2355_v44  ;;  %v2915_v44 = vld [vmem:[%s4329_s21] ss:$0 sm:$0xff] }
 0xe83   : > { %v2353_v56 = vpop.xlane.xlu1 %2352 }
 0xe84   : > { %v2354_v57 = vmul.f32 0.020833334, %v2353_v56 }
 0xe86   : > { %v2359_v58 = vmul.f32 %v2354_v57, %v2354_v57  ;;  %v2361_v63 = vsub.f32 %v4205_v42, %v2354_v57 }
 0xe87   : > { %v2357_v53 = vpop.xlane.xlu1 %2356 }
 0xe88   : > { %v2358_v62 = vmul.f32 0.020833334, %v2357_v53 }
 0xe8a   : > { %v2360_v59 = vsub.f32 %v2358_v62, %v2359_v58 }
 0xe8c   : > { %v2362_v61 = vadd.f32 1e-05, %v2360_v59 }
 0xe8e   : > { %3482 = vrsqrt.f32 %v2362_v61 }
 0xe98   : > { %v3483_v43 = vpop.eup %3482 }
 0xe99   : > { %v2364_v4 = vmul.f32 %v3483_v43, %v2361_v63 }
 0xe9b   : > { %v2371_v6 = vmul.f32 %v2904_v3, %v2364_v4 }
 0xe9d   : > { %v2378_v7 = vadd.f32 %v2905_v5, %v2371_v6 }
 0xe9f   : > { %v2379_v8 = vpack.c.bf16 %v2378_v7, %v2378_v7 }
 0xea1   : > { %3155 = vmatmul.mubr.bf16.vlgmr.msra.gmra.mrb[32].mxu0 %v2379_v8 }
 0xf74   : > { %v2485_v16 = vpop.f32.mrb[32].mxu0 }
 0xf75   : > { %v2486_v48 = vadd.f32 %v2906_v15, %v2485_v16  ;;  %v3156_v17 = vpop.f32.mrb[33].mxu0 }
 0xf76   : > { %v2488_v18 = vpop.f32.mrb[34].mxu0 }
 0xf77   : > { %v2491_v19 = vmul.f32 0.70710677, %v2486_v48  ;;  %v3157_v60 = vpop.f32.mrb[35].mxu0  ;;  %v2514_v11 = vmul.f32 0.5, %v2486_v48 }
 0xf79   : > { %v2492_v20 = vand.u32 2147483647, %v2491_v19  ;;  %vm2511_vm3 = vcmp.ge.f32.partialorder %v2491_v19, 0.0 }
 0xf7b   : > { %v2493_v21 = vmul.f32 0.3275911, %v2492_v20  ;;  %v2505_v23 = vsub.f32 0.0, %v2492_v20 }
 0xf7d   : > { %v2494_v22 = vadd.f32 1.0, %v2493_v21  ;;  %v2506_v25 = vmul.f32 %v2505_v23, %v2492_v20 }
 0xf7f   : > { %3484 = vrcp.f32 %v2494_v22  ;;  %v2507_v27 = vmul.f32 1.442695, %v2506_v25 }
 0xf81   : > { %3486 = vpow2.f32 %v2507_v27 }
 0xf89   : > { %v3485_v24 = vpop.eup %3484 }
 0xf8a   : > { %v2496_v50 = vmul.f32 1.0614054, %v3485_v24 }
 0xf8b   : > { %v3487_v32 = vpop.eup %3486 }
 0xf8c   : > { %v2497_v26 = vadd.f32 -1.4531521, %v2496_v50 }
 0xf8e   : > { %v2498_v0 = vmul.f32 %v3485_v24, %v2497_v26 }
 0xf90   : > { %v2499_v10 = vadd.f32 1.4214138, %v2498_v0 }
 0xf92   : > { %v2500_v28 = vmul.f32 %v3485_v24, %v2499_v10 }
 0xf94   : > { %v2501_v29 = vadd.f32 -0.28449672, %v2500_v28 }
 0xf96   : > { %v2502_v30 = vmul.f32 %v3485_v24, %v2501_v29 }
 0xf98   : > { %v2503_v31 = vadd.f32 0.2548296, %v2502_v30 }
 0xf9a   : > { %v2504_v33 = vmul.f32 %v3485_v24, %v2503_v31 }
 0xf9c   : > { %v2509_v34 = vmul.f32 %v3487_v32, %v2504_v33 }
 0xf9e   : > { %v2510_v35 = vsub.f32 1.0, %v2509_v34 }
 0xfa0   : > { %v2512_v37 = vsub.f32 0.0, %v2510_v35 }
 0xfa2   : > { %v2513_v36 = vsel %vm2511_vm3, %v2510_v35, %v2512_v37 }
 0xfa3   : > { %v2515_v38 = vadd.f32 1.0, %v2513_v36 }
 0xfa5   : > { %v2516_v39 = vmul.f32 %v2515_v38, %v2514_v11 }
 0xfa7   : > { %v2517_v40 = vpack.c.bf16 %v2516_v39, %v2516_v39 }
 0xfa9   : > { %3175 = vmatmul.mubr.bf16.vlgmr.msra.gmra.mrb[32].mxu1 %v2517_v40 }
0x107c   : > { %v2623_v45 = vpop.f32.mrb[32].mxu1 }
0x107d   : > { %v2624_v2 = vadd.f32 %v2915_v44, %v2623_v45  ;;  %v3176_v46 = vpop.f32.mrb[33].mxu1 }
0x107e   : > { %v2626_v47 = vpop.f32.mrb[34].mxu1 }
0x107f   : > { %v2629_v49 = vadd.f32 %v2624_v2, %v4205_v42  ;;  %v3177_v51 = vpop.f32.mrb[35].mxu1 }
0x1081   : > { %2630 = vst [vmem:[%s513_s20] sm:$0xff] %v2629_v49 }
0x1082   : > { %3644 = shalt.err (!%p3641_p12)
}
0x1083   : > { %s3645_s3 = scalar_lea.hbm %s4243_s12, 128  ;;  %s3649_s29 = scalar_lea.hbm %s4330_s13, 256 }
0x1084   : > { %p3646_p13 = scmp.ne.s32.totalorder %s4243_s12, %s3645_s3  ;;  %p3650_p9 = scmp.lt.u32.totalorder %s4243_s12, %s4330_s13 }
0x1085   : > { %p3651_p4 = scmp.lt.u32.totalorder %s3649_s29, %s3645_s3  ;;  %p3653_p6 = scmp.lt.u32.totalorder %s3645_s3, %s4243_s12 }
0x1086   : > { %p3647_p3 = pnand %p3646_p13, %p4331_p0 }
0x1087   : > { %p3652_p8 = por %p3651_p4, %p3650_p9 }
0x1088   : > { %p3648_p7 = pneg %p3647_p3 }
0x1089   : > { %p3654_p2 = por %p3653_p6, %p3652_p8 }
0x108b   : > { %p3655_p5 = pnand %p3654_p2, %p3648_p7 }
0x108d   : > { %3658 = shalt.err (!%p3655_p5)
}
0x108e   : > { %3196 = dma.vmem_to_hbm [thread:$0]  (%p4331_p0), %s4245_s15, 128, %s4243_s12, %s2632_s14  }
0x108f PF: > { %s2657_s18 = sand.u32 1, %s3693_s25   ;;  %p4332_p10 = scmp.ne.s32.totalorder %s4319_s17, 0 }
0x1090   : > { %p4333_p1 = scmp.ge.s32.totalorder %s3705_s28, 2  ;;  %s2658_s30 = scalar_lea.sflag [#allocation5], %s2657_s18 }
0x1092   : > { %p3216_p11 = pnand %p4333_p1, %p4332_p10 }
0x1094   : > { %3688 = dma.done.wait (!%p3216_p11), %s2658_s30, 128  }
0x1095   : > { %3690 = vsyncadd (!%p3216_p11), %s2658_s30, 4294967168  ;;  %p28_p12 = scmp.ge.s32.totalorder %s3935_s16, 4   ;;  %s4334_s25 = smov %s3697_s26 }
0x1096   : > { %s4335_s26 = smov %s3701_s27  ;;  %s4336_s27 = smov %s3946_s24 }
0x1097   : > { %s4337_s28 = smov %s3935_s16  ;;  %30 = sbr.rel (!%p28_p12) target bundleno = 14 (0xe), region = 133 }
0x109e   :  { %2663 = vsyncpa [#allocation4], 1 }
0x109f   :  { %2665 = vsyncpa [#allocation4 + $0x1], 1 }
0x10a0   :  { %2666 = vsyncpa [#allocation7], 1 }
0x10a1   :  { %2667 = vsyncpa [#allocation10], 1 }
0x10a2   :  { %2668 = vsyncpa [#allocation5], 1 }
0x10a3   :  { %2670 = vsyncpa [#allocation5 + $0x1], 1 }

</bundles_post_ra>
